<compile_context>
chip_gen: v6e
topology: v6e:2x2x1
jax: 0.10.0
libtpu: 0.0.40
codegen_flags: <defaults>
</compile_context>

<pallas_src>
import jax
import jax.numpy as jnp
import numpy as np
from jax import lax
from jax.experimental import pallas as pl
from jax.experimental.pallas import tpu as pltpu

# ---------------- synthetic "utils" constants (deterministic, in-script) -----
PADDING = 0
AA_VOCAB_MAX = 24                 # aa vocab size = AA_VOCAB_MAX + 1

# ---------------- model config ("args") --------------------------------------
AA_HIDDEN = 32                    # args.aa_hidden; bidirectional -> out dim 64
# args.aa_bilstm_layers = 1, args.aa_dropout = 0, args.aa_onedirect = False


# ============================= Pallas kernel =================================
def _bilstm_kernel(idx_ref, tabf_ref, tabb_ref, whh_ref, out_ref):
    """Fused fwd+bwd LSTM recurrence with in-kernel embedding-table gather.

    idx_ref : SMEM (B, S) int32    token ids (batch_first, as given).
    tabf_ref: VMEM (V, 1, 8H) f32  fwd  contributions (one_hot@W_ih + b), nonzero
                                   only in direction-0 lanes of the 8H layout.
    tabb_ref: VMEM (V, 1, 8H) f32  bwd  contributions, direction-1 lanes.
    whh_ref : VMEM (2H, 8H) f32    block-structured recurrent weights (both dirs).
    out_ref : VMEM (S, B, 2H) f32  step-major output, features [h_fwd | h_bwd];
                                   the bwd half is in processing (reversed) order.

    Lane layout is gate-major / direction-minor: lane = 2H*gate + dir*H + h,
    gate order i, f, g, o.
    """
    S, B, H2 = out_ref.shape
    H = H2 // 2
    G = whh_ref.shape[1]                       # 8H

    whh = whh_ref[...]                         # hoisted; kept vreg-resident

    # tanh gate block = gate index 2 -> lanes [4H, 6H).  sigmoid(x)=0.5*(1+tanh(x/2))
    lane = lax.broadcasted_iota(jnp.int32, (B, G), 1)
    is_g = (lane >= 4 * H) & (lane < 6 * H)
    scale = jnp.where(is_g, 1.0, 0.5).astype(jnp.float32)

    def step(t, carry):
        h, c = carry                           # (B, 2H) each, register-carried
        # Input-gate contributions for both directions: independent of h, so
        # these gathers sit off the recurrent critical path.
        rows = []
        for b in range(B):                     # B is static & tiny -> unrolled
            vf = idx_ref[b, t]                 # fwd token at step t
            vb = idx_ref[b, S - 1 - t]         # bwd token at step t
            rows.append(tabf_ref[vf] + tabb_ref[vb])      # (1, 8H)
        g_t = jnp.concatenate(rows, axis=0)    # (B, 8H)

        # Single MXU dot per step: (B, 2H) @ (2H, 8H) -> both directions' gates.
        gates = jnp.dot(h, whh, preferred_element_type=jnp.float32) + g_t
        th = jnp.tanh(gates * scale)           # one EUP pass over (B, 8H)
        act = jnp.where(is_g, th, 0.5 * (th + 1.0))
        i = act[:, 0 * 2 * H:1 * 2 * H]
        f = act[:, 1 * 2 * H:2 * 2 * H]
        g = act[:, 2 * 2 * H:3 * 2 * H]
        o = act[:, 3 * 2 * H:4 * 2 * H]
        c_new = f * c + i * g
        h_new = o * jnp.tanh(c_new)
        out_ref[t] = h_new                     # one wide (B, 2H) store per step
        return (h_new, c_new)

    h0 = jnp.zeros((B, H2), jnp.float32)
    c0 = jnp.zeros((B, H2), jnp.float32)
    lax.fori_loop(0, S, step, (h0, c0), unroll=True)


# ============================= parameter repack (one-time) ====================
def prepare_params(params):
    """Hoisted out of the per-call path: fold one_hot@W_ih+b into lookup tables
    (PADDING row of the one-hot embedding is zero -> that row is bias only) and
    pack both directions' recurrent weights into one block-structured matrix."""
    H = AA_HIDDEN
    w_ih_f, w_hh_f, b_f = params["fwd"]
    w_ih_b, w_hh_b, b_b = params["bwd"]
    V = w_ih_f.shape[0]

    def fold_table(w_ih, b, d):
        t = (w_ih.at[PADDING].set(0.0) + b[None, :]).reshape(V, 4, H)
        full = jnp.zeros((V, 4, 2, H), jnp.float32).at[:, :, d, :].set(t)
        return full.reshape(V, 1, 8 * H)       # leading-axis gather friendly

    tabf = fold_table(w_ih_f, b_f, 0)
    tabb = fold_table(w_ih_b, b_b, 1)

    # Rows [0:H] act on h_fwd (dir-0 lanes), rows [H:2H] act on h_bwd (dir-1).
    w_cat = jnp.zeros((2 * H, 4, 2, H), jnp.float32)
    w_cat = w_cat.at[:H, :, 0, :].set(w_hh_f.reshape(H, 4, H))
    w_cat = w_cat.at[H:, :, 1, :].set(w_hh_b.reshape(H, 4, H))
    whh = w_cat.reshape(2 * H, 8 * H)

    return {"tabf": tabf, "tabb": tabb, "whh": whh}


# ============================= wrapper ========================================
@jax.jit
def aa_bilstm_forward(packed, aa_seq):
    """aa_seq: (B, S) int32 -> (B, S, 2*AA_HIDDEN) f32 (batch_first)."""
    B, S = aa_seq.shape
    H = AA_HIDDEN

    vmem = pl.BlockSpec(memory_space=pltpu.MemorySpace.VMEM)
    smem = pl.BlockSpec(memory_space=pltpu.MemorySpace.SMEM)

    out_tm = pl.pallas_call(
        _bilstm_kernel,
        out_shape=jax.ShapeDtypeStruct((S, B, 2 * H), jnp.float32),
        in_specs=[smem, vmem, vmem, vmem],
        out_specs=vmem,
    )(jnp.asarray(aa_seq, jnp.int32), packed["tabf"], packed["tabb"],
      packed["whh"])

    out_bt = jnp.swapaxes(out_tm, 0, 1)                      # (B, S, 2H)
    # bwd half was written in processing (reversed-time) order; the flip fuses
    # with the transpose/concat here (feedback #5).
    return jnp.concatenate([out_bt[:, :, :H], out_bt[:, ::-1, H:]], axis=-1)


# ============================= parameters =====================================
def init_lstm_params(key, din, hidden):
    k1, k2, k3, k4 = jax.random.split(key, 4)
    s = 1.0 / np.sqrt(hidden)
    w_ih = jax.random.uniform(k1, (din, 4 * hidden), jnp.float32, -s, s)
    w_hh = jax.random.uniform(k2, (hidden, 4 * hidden), jnp.float32, -s, s)
    b_ih = jax.random.uniform(k3, (4 * hidden,), jnp.float32, -s, s)
    b_hh = jax.random.uniform(k4, (4 * hidden,), jnp.float32, -s, s)
    return w_ih, w_hh, b_ih + b_hh


def init_params(key):
    kf, kb = jax.random.split(key)
    din = AA_VOCAB_MAX + 1
    return {"fwd": init_lstm_params(kf, din, AA_HIDDEN),
            "bwd": init_lstm_params(kb, din, AA_HIDDEN)}


# ============================= pure-JAX reference =============================
def one_hot_embed(idx, vocab):
    oh = jax.nn.one_hot(idx, vocab, dtype=jnp.float32)
    return oh * (idx != PADDING)[..., None].astype(jnp.float32)


def _lstm_ref(x, w_ih, w_hh, b):                       # x: (B, S, Din)
    H = w_hh.shape[0]
    B = x.shape[0]

    def step(carry, x_t):
        h, c = carry
        g = x_t @ w_ih + h @ w_hh + b
        i = jax.nn.sigmoid(g[:, :H])
        f = jax.nn.sigmoid(g[:, H:2 * H])
        gg = jnp.tanh(g[:, 2 * H:3 * H])
        o = jax.nn.sigmoid(g[:, 3 * H:])
        c = f * c + i * gg
        h = o * jnp.tanh(c)
        return (h, c), h

    init = (jnp.zeros((B, H), jnp.float32), jnp.zeros((B, H), jnp.float32))
    _, hs = jax.lax.scan(step, init, jnp.swapaxes(x, 0, 1))
    return jnp.swapaxes(hs, 0, 1)


def forward_ref(params, aa_seq):
    oh = one_hot_embed(aa_seq, AA_VOCAB_MAX + 1)
    fwd = _lstm_ref(oh, *params["fwd"])
    bwd = _lstm_ref(oh[:, ::-1], *params["bwd"])[:, ::-1]
    return jnp.concatenate([fwd, bwd], axis=-1)


# ==================================== main ====================================
if __name__ == "__main__":
    key = jax.random.PRNGKey(0)
    pkey, dkey = jax.random.split(key)

    params = init_params(pkey)
    packed = prepare_params(params)          # one-time repack (not per call)

    B, S = 2, 8
    aa_seq = jax.random.randint(dkey, (B, S), 0, AA_VOCAB_MAX + 1,
                                dtype=jnp.int32)   # includes PADDING=0 cases

    out = aa_bilstm_forward(packed, aa_seq)
    out = jax.block_until_ready(out)

    ref = forward_ref(params, aa_seq)
    np.testing.assert_allclose(np.asarray(out), np.asarray(ref),
                               rtol=1e-3, atol=1e-3)
    assert out.shape == (B, S, 2 * AA_HIDDEN)
    print("KERNEL_OK")
</pallas_src>

<mosaic_0001>
module attributes {stable_mosaic.version = 11 : i64} {
  func.func @_bilstm_kernel(%arg0: memref<2x8xi32, #tpu.memory_space<smem>>, %arg1: memref<25x1x256xf32, #tpu.memory_space<vmem>>, %arg2: memref<25x1x256xf32, #tpu.memory_space<vmem>>, %arg3: memref<64x256xf32, #tpu.memory_space<vmem>>, %arg4: memref<8x2x64xf32, #tpu.memory_space<vmem>>) attributes {dimension_semantics = [], scalar_prefetch = 0 : i64, scratch_operands = 0 : i64, tpu.core_type = #tpu.core_type<tc>} {
    %c0 = arith.constant 0 : index
    %c0_0 = arith.constant 0 : index
    %0 = vector.load %arg3[%c0, %c0_0] : memref<64x256xf32, #tpu.memory_space<vmem>>, vector<64x256xf32>
    %1 = tpu.iota {dimensions = array<i32: 1>} : vector<2x256xi32>
    %c128_i32 = arith.constant 128 : i32
    %2 = vector.broadcast %c128_i32 : i32 to vector<2x256xi32>
    %3 = arith.cmpi sge, %1, %2 : vector<2x256xi32>
    %c192_i32 = arith.constant 192 : i32
    %4 = vector.broadcast %c192_i32 : i32 to vector<2x256xi32>
    %5 = arith.cmpi slt, %1, %4 : vector<2x256xi32>
    %6 = arith.andi %3, %5 : vector<2x256xi1>
    %cst = arith.constant 1.000000e+00 : f32
    %cst_1 = arith.constant 5.000000e-01 : f32
    %7 = vector.broadcast %cst : f32 to vector<2x256xf32>
    %8 = vector.broadcast %cst_1 : f32 to vector<2x256xf32>
    %9 = arith.select %6, %7, %8 : vector<2x256xi1>, vector<2x256xf32>
    %cst_2 = arith.constant 0.000000e+00 : f32
    %10 = vector.broadcast %cst_2 : f32 to vector<2x64xf32>
    %cst_3 = arith.constant 0.000000e+00 : f32
    %11 = vector.broadcast %cst_3 : f32 to vector<2x64xf32>
    %c0_i32 = arith.constant 0 : i32
    %c0_4 = arith.constant 0 : index
    %12 = arith.index_cast %c0_i32 : i32 to index
    %13 = memref.load %arg0[%c0_4, %12] : memref<2x8xi32, #tpu.memory_space<smem>>
    %c7_i32 = arith.constant 7 : i32
    %14 = arith.subi %c7_i32, %c0_i32 : i32
    %c0_5 = arith.constant 0 : index
    %15 = arith.index_cast %14 : i32 to index
    %16 = memref.load %arg0[%c0_5, %15] : memref<2x8xi32, #tpu.memory_space<smem>>
    %17 = arith.index_cast %13 : i32 to index
    %c0_6 = arith.constant 0 : index
    %c0_7 = arith.constant 0 : index
    %18 = vector.load %arg1[%17, %c0_6, %c0_7] : memref<25x1x256xf32, #tpu.memory_space<vmem>>, vector<1x1x256xf32>
    %19 = vector.shape_cast %18 : vector<1x1x256xf32> to vector<1x256xf32>
    %20 = arith.index_cast %16 : i32 to index
    %c0_8 = arith.constant 0 : index
    %c0_9 = arith.constant 0 : index
    %21 = vector.load %arg2[%20, %c0_8, %c0_9] : memref<25x1x256xf32, #tpu.memory_space<vmem>>, vector<1x1x256xf32>
    %22 = vector.shape_cast %21 : vector<1x1x256xf32> to vector<1x256xf32>
    %23 = arith.addf %19, %22 : vector<1x256xf32>
    %c1 = arith.constant 1 : index
    %24 = arith.index_cast %c0_i32 : i32 to index
    %25 = memref.load %arg0[%c1, %24] : memref<2x8xi32, #tpu.memory_space<smem>>
    %c7_i32_10 = arith.constant 7 : i32
    %26 = arith.subi %c7_i32_10, %c0_i32 : i32
    %c1_11 = arith.constant 1 : index
    %27 = arith.index_cast %26 : i32 to index
    %28 = memref.load %arg0[%c1_11, %27] : memref<2x8xi32, #tpu.memory_space<smem>>
    %29 = arith.index_cast %25 : i32 to index
    %c0_12 = arith.constant 0 : index
    %c0_13 = arith.constant 0 : index
    %30 = vector.load %arg1[%29, %c0_12, %c0_13] : memref<25x1x256xf32, #tpu.memory_space<vmem>>, vector<1x1x256xf32>
    %31 = vector.shape_cast %30 : vector<1x1x256xf32> to vector<1x256xf32>
    %32 = arith.index_cast %28 : i32 to index
    %c0_14 = arith.constant 0 : index
    %c0_15 = arith.constant 0 : index
    %33 = vector.load %arg2[%32, %c0_14, %c0_15] : memref<25x1x256xf32, #tpu.memory_space<vmem>>, vector<1x1x256xf32>
    %34 = vector.shape_cast %33 : vector<1x1x256xf32> to vector<1x256xf32>
    %35 = arith.addf %31, %34 : vector<1x256xf32>
    %36 = tpu.concatenate %23, %35 in 0 : vector<1x256xf32>, vector<1x256xf32> -> vector<2x256xf32>
    %cst_16 = arith.constant dense<0.000000e+00> : vector<2x256xf32>
    %37 = tpu.matmul %10, %0, %cst_16 {dimension_numbers = #tpu.dot_dimension_numbers<[1], [0], [0], [1], [0, 0, 1, 1], [], []>} : vector<2x64xf32>, vector<64x256xf32>, vector<2x256xf32> -> vector<2x256xf32>
    %38 = arith.addf %37, %36 : vector<2x256xf32>
    %39 = arith.mulf %38, %9 : vector<2x256xf32>
    %40 = math.tanh %39 : vector<2x256xf32>
    %cst_17 = arith.constant 1.000000e+00 : f32
    %41 = vector.broadcast %cst_17 : f32 to vector<2x256xf32>
    %42 = arith.addf %40, %41 : vector<2x256xf32>
    %cst_18 = arith.constant 5.000000e-01 : f32
    %43 = vector.broadcast %cst_18 : f32 to vector<2x256xf32>
    %44 = arith.mulf %43, %42 : vector<2x256xf32>
    %45 = arith.select %6, %40, %44 : vector<2x256xi1>, vector<2x256xf32>
    %46 = vector.extract_strided_slice %45 {offsets = [0, 0], sizes = [2, 64], strides = [1, 1]} : vector<2x256xf32> to vector<2x64xf32>
    %47 = vector.extract_strided_slice %45 {offsets = [0, 64], sizes = [2, 64], strides = [1, 1]} : vector<2x256xf32> to vector<2x64xf32>
    %48 = vector.extract_strided_slice %45 {offsets = [0, 128], sizes = [2, 64], strides = [1, 1]} : vector<2x256xf32> to vector<2x64xf32>
    %49 = vector.extract_strided_slice %45 {offsets = [0, 192], sizes = [2, 64], strides = [1, 1]} : vector<2x256xf32> to vector<2x64xf32>
    %50 = arith.mulf %47, %11 : vector<2x64xf32>
    %51 = arith.mulf %46, %48 : vector<2x64xf32>
    %52 = arith.addf %50, %51 : vector<2x64xf32>
    %53 = math.tanh %52 : vector<2x64xf32>
    %54 = arith.mulf %49, %53 : vector<2x64xf32>
    %55 = arith.index_cast %c0_i32 : i32 to index
    %c0_19 = arith.constant 0 : index
    %c0_20 = arith.constant 0 : index
    %56 = vector.load %arg4[%55, %c0_19, %c0_20] : memref<8x2x64xf32, #tpu.memory_space<vmem>>, vector<1x2x64xf32>
    %57 = vector.shape_cast %56 : vector<1x2x64xf32> to vector<2x64xf32>
    %58 = vector.shape_cast %54 : vector<2x64xf32> to vector<1x2x64xf32>
    tpu.vector_store %arg4[%55, %c0_19, %c0_20], %58 {strides = array<i32>} : memref<8x2x64xf32, #tpu.memory_space<vmem>>, vector<1x2x64xf32>,
    %c1_i32 = arith.constant 1 : i32
    %c0_21 = arith.constant 0 : index
    %59 = arith.index_cast %c1_i32 : i32 to index
    %60 = memref.load %arg0[%c0_21, %59] : memref<2x8xi32, #tpu.memory_space<smem>>
    %c7_i32_22 = arith.constant 7 : i32
    %61 = arith.subi %c7_i32_22, %c1_i32 : i32
    %c0_23 = arith.constant 0 : index
    %62 = arith.index_cast %61 : i32 to index
    %63 = memref.load %arg0[%c0_23, %62] : memref<2x8xi32, #tpu.memory_space<smem>>
    %64 = arith.index_cast %60 : i32 to index
    %c0_24 = arith.constant 0 : index
    %c0_25 = arith.constant 0 : index
    %65 = vector.load %arg1[%64, %c0_24, %c0_25] : memref<25x1x256xf32, #tpu.memory_space<vmem>>, vector<1x1x256xf32>
    %66 = vector.shape_cast %65 : vector<1x1x256xf32> to vector<1x256xf32>
    %67 = arith.index_cast %63 : i32 to index
    %c0_26 = arith.constant 0 : index
    %c0_27 = arith.constant 0 : index
    %68 = vector.load %arg2[%67, %c0_26, %c0_27] : memref<25x1x256xf32, #tpu.memory_space<vmem>>, vector<1x1x256xf32>
    %69 = vector.shape_cast %68 : vector<1x1x256xf32> to vector<1x256xf32>
    %70 = arith.addf %66, %69 : vector<1x256xf32>
    %c1_28 = arith.constant 1 : index
    %71 = arith.index_cast %c1_i32 : i32 to index
    %72 = memref.load %arg0[%c1_28, %71] : memref<2x8xi32, #tpu.memory_space<smem>>
    %c7_i32_29 = arith.constant 7 : i32
    %73 = arith.subi %c7_i32_29, %c1_i32 : i32
    %c1_30 = arith.constant 1 : index
    %74 = arith.index_cast %73 : i32 to index
    %75 = memref.load %arg0[%c1_30, %74] : memref<2x8xi32, #tpu.memory_space<smem>>
    %76 = arith.index_cast %72 : i32 to index
    %c0_31 = arith.constant 0 : index
    %c0_32 = arith.constant 0 : index
    %77 = vector.load %arg1[%76, %c0_31, %c0_32] : memref<25x1x256xf32, #tpu.memory_space<vmem>>, vector<1x1x256xf32>
    %78 = vector.shape_cast %77 : vector<1x1x256xf32> to vector<1x256xf32>
    %79 = arith.index_cast %75 : i32 to index
    %c0_33 = arith.constant 0 : index
    %c0_34 = arith.constant 0 : index
    %80 = vector.load %arg2[%79, %c0_33, %c0_34] : memref<25x1x256xf32, #tpu.memory_space<vmem>>, vector<1x1x256xf32>
    %81 = vector.shape_cast %80 : vector<1x1x256xf32> to vector<1x256xf32>
    %82 = arith.addf %78, %81 : vector<1x256xf32>
    %83 = tpu.concatenate %70, %82 in 0 : vector<1x256xf32>, vector<1x256xf32> -> vector<2x256xf32>
    %cst_35 = arith.constant dense<0.000000e+00> : vector<2x256xf32>
    %84 = tpu.matmul %54, %0, %cst_35 {dimension_numbers = #tpu.dot_dimension_numbers<[1], [0], [0], [1], [0, 0, 1, 1], [], []>} : vector<2x64xf32>, vector<64x256xf32>, vector<2x256xf32> -> vector<2x256xf32>
    %85 = arith.addf %84, %83 : vector<2x256xf32>
    %86 = arith.mulf %85, %9 : vector<2x256xf32>
    %87 = math.tanh %86 : vector<2x256xf32>
    %cst_36 = arith.constant 1.000000e+00 : f32
    %88 = vector.broadcast %cst_36 : f32 to vector<2x256xf32>
    %89 = arith.addf %87, %88 : vector<2x256xf32>
    %cst_37 = arith.constant 5.000000e-01 : f32
    %90 = vector.broadcast %cst_37 : f32 to vector<2x256xf32>
    %91 = arith.mulf %90, %89 : vector<2x256xf32>
    %92 = arith.select %6, %87, %91 : vector<2x256xi1>, vector<2x256xf32>
    %93 = vector.extract_strided_slice %92 {offsets = [0, 0], sizes = [2, 64], strides = [1, 1]} : vector<2x256xf32> to vector<2x64xf32>
    %94 = vector.extract_strided_slice %92 {offsets = [0, 64], sizes = [2, 64], strides = [1, 1]} : vector<2x256xf32> to vector<2x64xf32>
    %95 = vector.extract_strided_slice %92 {offsets = [0, 128], sizes = [2, 64], strides = [1, 1]} : vector<2x256xf32> to vector<2x64xf32>
    %96 = vector.extract_strided_slice %92 {offsets = [0, 192], sizes = [2, 64], strides = [1, 1]} : vector<2x256xf32> to vector<2x64xf32>
    %97 = arith.mulf %94, %52 : vector<2x64xf32>
    %98 = arith.mulf %93, %95 : vector<2x64xf32>
    %99 = arith.addf %97, %98 : vector<2x64xf32>
    %100 = math.tanh %99 : vector<2x64xf32>
    %101 = arith.mulf %96, %100 : vector<2x64xf32>
    %102 = arith.index_cast %c1_i32 : i32 to index
    %c0_38 = arith.constant 0 : index
    %c0_39 = arith.constant 0 : index
    %103 = vector.load %arg4[%102, %c0_38, %c0_39] : memref<8x2x64xf32, #tpu.memory_space<vmem>>, vector<1x2x64xf32>
    %104 = vector.shape_cast %103 : vector<1x2x64xf32> to vector<2x64xf32>
    %105 = vector.shape_cast %101 : vector<2x64xf32> to vector<1x2x64xf32>
    tpu.vector_store %arg4[%102, %c0_38, %c0_39], %105 {strides = array<i32>} : memref<8x2x64xf32, #tpu.memory_space<vmem>>, vector<1x2x64xf32>,
    %c2_i32 = arith.constant 2 : i32
    %c0_40 = arith.constant 0 : index
    %106 = arith.index_cast %c2_i32 : i32 to index
    %107 = memref.load %arg0[%c0_40, %106] : memref<2x8xi32, #tpu.memory_space<smem>>
    %c7_i32_41 = arith.constant 7 : i32
    %108 = arith.subi %c7_i32_41, %c2_i32 : i32
    %c0_42 = arith.constant 0 : index
    %109 = arith.index_cast %108 : i32 to index
    %110 = memref.load %arg0[%c0_42, %109] : memref<2x8xi32, #tpu.memory_space<smem>>
    %111 = arith.index_cast %107 : i32 to index
    %c0_43 = arith.constant 0 : index
    %c0_44 = arith.constant 0 : index
    %112 = vector.load %arg1[%111, %c0_43, %c0_44] : memref<25x1x256xf32, #tpu.memory_space<vmem>>, vector<1x1x256xf32>
    %113 = vector.shape_cast %112 : vector<1x1x256xf32> to vector<1x256xf32>
    %114 = arith.index_cast %110 : i32 to index
    %c0_45 = arith.constant 0 : index
    %c0_46 = arith.constant 0 : index
    %115 = vector.load %arg2[%114, %c0_45, %c0_46] : memref<25x1x256xf32, #tpu.memory_space<vmem>>, vector<1x1x256xf32>
    %116 = vector.shape_cast %115 : vector<1x1x256xf32> to vector<1x256xf32>
    %117 = arith.addf %113, %116 : vector<1x256xf32>
    %c1_47 = arith.constant 1 : index
    %118 = arith.index_cast %c2_i32 : i32 to index
    %119 = memref.load %arg0[%c1_47, %118] : memref<2x8xi32, #tpu.memory_space<smem>>
    %c7_i32_48 = arith.constant 7 : i32
    %120 = arith.subi %c7_i32_48, %c2_i32 : i32
    %c1_49 = arith.constant 1 : index
    %121 = arith.index_cast %120 : i32 to index
    %122 = memref.load %arg0[%c1_49, %121] : memref<2x8xi32, #tpu.memory_space<smem>>
    %123 = arith.index_cast %119 : i32 to index
    %c0_50 = arith.constant 0 : index
    %c0_51 = arith.constant 0 : index
    %124 = vector.load %arg1[%123, %c0_50, %c0_51] : memref<25x1x256xf32, #tpu.memory_space<vmem>>, vector<1x1x256xf32>
    %125 = vector.shape_cast %124 : vector<1x1x256xf32> to vector<1x256xf32>
    %126 = arith.index_cast %122 : i32 to index
    %c0_52 = arith.constant 0 : index
    %c0_53 = arith.constant 0 : index
    %127 = vector.load %arg2[%126, %c0_52, %c0_53] : memref<25x1x256xf32, #tpu.memory_space<vmem>>, vector<1x1x256xf32>
    %128 = vector.shape_cast %127 : vector<1x1x256xf32> to vector<1x256xf32>
    %129 = arith.addf %125, %128 : vector<1x256xf32>
    %130 = tpu.concatenate %117, %129 in 0 : vector<1x256xf32>, vector<1x256xf32> -> vector<2x256xf32>
    %cst_54 = arith.constant dense<0.000000e+00> : vector<2x256xf32>
    %131 = tpu.matmul %101, %0, %cst_54 {dimension_numbers = #tpu.dot_dimension_numbers<[1], [0], [0], [1], [0, 0, 1, 1], [], []>} : vector<2x64xf32>, vector<64x256xf32>, vector<2x256xf32> -> vector<2x256xf32>
    %132 = arith.addf %131, %130 : vector<2x256xf32>
    %133 = arith.mulf %132, %9 : vector<2x256xf32>
    %134 = math.tanh %133 : vector<2x256xf32>
    %cst_55 = arith.constant 1.000000e+00 : f32
    %135 = vector.broadcast %cst_55 : f32 to vector<2x256xf32>
    %136 = arith.addf %134, %135 : vector<2x256xf32>
    %cst_56 = arith.constant 5.000000e-01 : f32
    %137 = vector.broadcast %cst_56 : f32 to vector<2x256xf32>
    %138 = arith.mulf %137, %136 : vector<2x256xf32>
    %139 = arith.select %6, %134, %138 : vector<2x256xi1>, vector<2x256xf32>
    %140 = vector.extract_strided_slice %139 {offsets = [0, 0], sizes = [2, 64], strides = [1, 1]} : vector<2x256xf32> to vector<2x64xf32>
    %141 = vector.extract_strided_slice %139 {offsets = [0, 64], sizes = [2, 64], strides = [1, 1]} : vector<2x256xf32> to vector<2x64xf32>
    %142 = vector.extract_strided_slice %139 {offsets = [0, 128], sizes = [2, 64], strides = [1, 1]} : vector<2x256xf32> to vector<2x64xf32>
    %143 = vector.extract_strided_slice %139 {offsets = [0, 192], sizes = [2, 64], strides = [1, 1]} : vector<2x256xf32> to vector<2x64xf32>
    %144 = arith.mulf %141, %99 : vector<2x64xf32>
    %145 = arith.mulf %140, %142 : vector<2x64xf32>
    %146 = arith.addf %144, %145 : vector<2x64xf32>
    %147 = math.tanh %146 : vector<2x64xf32>
    %148 = arith.mulf %143, %147 : vector<2x64xf32>
    %149 = arith.index_cast %c2_i32 : i32 to index
    %c0_57 = arith.constant 0 : index
    %c0_58 = arith.constant 0 : index
    %150 = vector.load %arg4[%149, %c0_57, %c0_58] : memref<8x2x64xf32, #tpu.memory_space<vmem>>, vector<1x2x64xf32>
    %151 = vector.shape_cast %150 : vector<1x2x64xf32> to vector<2x64xf32>
    %152 = vector.shape_cast %148 : vector<2x64xf32> to vector<1x2x64xf32>
    tpu.vector_store %arg4[%149, %c0_57, %c0_58], %152 {strides = array<i32>} : memref<8x2x64xf32, #tpu.memory_space<vmem>>, vector<1x2x64xf32>,
    %c3_i32 = arith.constant 3 : i32
    %c0_59 = arith.constant 0 : index
    %153 = arith.index_cast %c3_i32 : i32 to index
    %154 = memref.load %arg0[%c0_59, %153] : memref<2x8xi32, #tpu.memory_space<smem>>
    %c7_i32_60 = arith.constant 7 : i32
    %155 = arith.subi %c7_i32_60, %c3_i32 : i32
    %c0_61 = arith.constant 0 : index
    %156 = arith.index_cast %155 : i32 to index
    %157 = memref.load %arg0[%c0_61, %156] : memref<2x8xi32, #tpu.memory_space<smem>>
    %158 = arith.index_cast %154 : i32 to index
    %c0_62 = arith.constant 0 : index
    %c0_63 = arith.constant 0 : index
    %159 = vector.load %arg1[%158, %c0_62, %c0_63] : memref<25x1x256xf32, #tpu.memory_space<vmem>>, vector<1x1x256xf32>
    %160 = vector.shape_cast %159 : vector<1x1x256xf32> to vector<1x256xf32>
    %161 = arith.index_cast %157 : i32 to index
    %c0_64 = arith.constant 0 : index
    %c0_65 = arith.constant 0 : index
    %162 = vector.load %arg2[%161, %c0_64, %c0_65] : memref<25x1x256xf32, #tpu.memory_space<vmem>>, vector<1x1x256xf32>
    %163 = vector.shape_cast %162 : vector<1x1x256xf32> to vector<1x256xf32>
    %164 = arith.addf %160, %163 : vector<1x256xf32>
    %c1_66 = arith.constant 1 : index
    %165 = arith.index_cast %c3_i32 : i32 to index
    %166 = memref.load %arg0[%c1_66, %165] : memref<2x8xi32, #tpu.memory_space<smem>>
    %c7_i32_67 = arith.constant 7 : i32
    %167 = arith.subi %c7_i32_67, %c3_i32 : i32
    %c1_68 = arith.constant 1 : index
    %168 = arith.index_cast %167 : i32 to index
    %169 = memref.load %arg0[%c1_68, %168] : memref<2x8xi32, #tpu.memory_space<smem>>
    %170 = arith.index_cast %166 : i32 to index
    %c0_69 = arith.constant 0 : index
    %c0_70 = arith.constant 0 : index
    %171 = vector.load %arg1[%170, %c0_69, %c0_70] : memref<25x1x256xf32, #tpu.memory_space<vmem>>, vector<1x1x256xf32>
    %172 = vector.shape_cast %171 : vector<1x1x256xf32> to vector<1x256xf32>
    %173 = arith.index_cast %169 : i32 to index
    %c0_71 = arith.constant 0 : index
    %c0_72 = arith.constant 0 : index
    %174 = vector.load %arg2[%173, %c0_71, %c0_72] : memref<25x1x256xf32, #tpu.memory_space<vmem>>, vector<1x1x256xf32>
    %175 = vector.shape_cast %174 : vector<1x1x256xf32> to vector<1x256xf32>
    %176 = arith.addf %172, %175 : vector<1x256xf32>
    %177 = tpu.concatenate %164, %176 in 0 : vector<1x256xf32>, vector<1x256xf32> -> vector<2x256xf32>
    %cst_73 = arith.constant dense<0.000000e+00> : vector<2x256xf32>
    %178 = tpu.matmul %148, %0, %cst_73 {dimension_numbers = #tpu.dot_dimension_numbers<[1], [0], [0], [1], [0, 0, 1, 1], [], []>} : vector<2x64xf32>, vector<64x256xf32>, vector<2x256xf32> -> vector<2x256xf32>
    %179 = arith.addf %178, %177 : vector<2x256xf32>
    %180 = arith.mulf %179, %9 : vector<2x256xf32>
    %181 = math.tanh %180 : vector<2x256xf32>
    %cst_74 = arith.constant 1.000000e+00 : f32
    %182 = vector.broadcast %cst_74 : f32 to vector<2x256xf32>
    %183 = arith.addf %181, %182 : vector<2x256xf32>
    %cst_75 = arith.constant 5.000000e-01 : f32
    %184 = vector.broadcast %cst_75 : f32 to vector<2x256xf32>
    %185 = arith.mulf %184, %183 : vector<2x256xf32>
    %186 = arith.select %6, %181, %185 : vector<2x256xi1>, vector<2x256xf32>
    %187 = vector.extract_strided_slice %186 {offsets = [0, 0], sizes = [2, 64], strides = [1, 1]} : vector<2x256xf32> to vector<2x64xf32>
    %188 = vector.extract_strided_slice %186 {offsets = [0, 64], sizes = [2, 64], strides = [1, 1]} : vector<2x256xf32> to vector<2x64xf32>
    %189 = vector.extract_strided_slice %186 {offsets = [0, 128], sizes = [2, 64], strides = [1, 1]} : vector<2x256xf32> to vector<2x64xf32>
    %190 = vector.extract_strided_slice %186 {offsets = [0, 192], sizes = [2, 64], strides = [1, 1]} : vector<2x256xf32> to vector<2x64xf32>
    %191 = arith.mulf %188, %146 : vector<2x64xf32>
    %192 = arith.mulf %187, %189 : vector<2x64xf32>
    %193 = arith.addf %191, %192 : vector<2x64xf32>
    %194 = math.tanh %193 : vector<2x64xf32>
    %195 = arith.mulf %190, %194 : vector<2x64xf32>
    %196 = arith.index_cast %c3_i32 : i32 to index
    %c0_76 = arith.constant 0 : index
    %c0_77 = arith.constant 0 : index
    %197 = vector.load %arg4[%196, %c0_76, %c0_77] : memref<8x2x64xf32, #tpu.memory_space<vmem>>, vector<1x2x64xf32>
    %198 = vector.shape_cast %197 : vector<1x2x64xf32> to vector<2x64xf32>
    %199 = vector.shape_cast %195 : vector<2x64xf32> to vector<1x2x64xf32>
    tpu.vector_store %arg4[%196, %c0_76, %c0_77], %199 {strides = array<i32>} : memref<8x2x64xf32, #tpu.memory_space<vmem>>, vector<1x2x64xf32>,
    %c4_i32 = arith.constant 4 : i32
    %c0_78 = arith.constant 0 : index
    %200 = arith.index_cast %c4_i32 : i32 to index
    %201 = memref.load %arg0[%c0_78, %200] : memref<2x8xi32, #tpu.memory_space<smem>>
    %c7_i32_79 = arith.constant 7 : i32
    %202 = arith.subi %c7_i32_79, %c4_i32 : i32
    %c0_80 = arith.constant 0 : index
    %203 = arith.index_cast %202 : i32 to index
    %204 = memref.load %arg0[%c0_80, %203] : memref<2x8xi32, #tpu.memory_space<smem>>
    %205 = arith.index_cast %201 : i32 to index
    %c0_81 = arith.constant 0 : index
    %c0_82 = arith.constant 0 : index
    %206 = vector.load %arg1[%205, %c0_81, %c0_82] : memref<25x1x256xf32, #tpu.memory_space<vmem>>, vector<1x1x256xf32>
    %207 = vector.shape_cast %206 : vector<1x1x256xf32> to vector<1x256xf32>
    %208 = arith.index_cast %204 : i32 to index
    %c0_83 = arith.constant 0 : index
    %c0_84 = arith.constant 0 : index
    %209 = vector.load %arg2[%208, %c0_83, %c0_84] : memref<25x1x256xf32, #tpu.memory_space<vmem>>, vector<1x1x256xf32>
    %210 = vector.shape_cast %209 : vector<1x1x256xf32> to vector<1x256xf32>
    %211 = arith.addf %207, %210 : vector<1x256xf32>
    %c1_85 = arith.constant 1 : index
    %212 = arith.index_cast %c4_i32 : i32 to index
    %213 = memref.load %arg0[%c1_85, %212] : memref<2x8xi32, #tpu.memory_space<smem>>
    %c7_i32_86 = arith.constant 7 : i32
    %214 = arith.subi %c7_i32_86, %c4_i32 : i32
    %c1_87 = arith.constant 1 : index
    %215 = arith.index_cast %214 : i32 to index
    %216 = memref.load %arg0[%c1_87, %215] : memref<2x8xi32, #tpu.memory_space<smem>>
    %217 = arith.index_cast %213 : i32 to index
    %c0_88 = arith.constant 0 : index
    %c0_89 = arith.constant 0 : index
    %218 = vector.load %arg1[%217, %c0_88, %c0_89] : memref<25x1x256xf32, #tpu.memory_space<vmem>>, vector<1x1x256xf32>
    %219 = vector.shape_cast %218 : vector<1x1x256xf32> to vector<1x256xf32>
    %220 = arith.index_cast %216 : i32 to index
    %c0_90 = arith.constant 0 : index
    %c0_91 = arith.constant 0 : index
    %221 = vector.load %arg2[%220, %c0_90, %c0_91] : memref<25x1x256xf32, #tpu.memory_space<vmem>>, vector<1x1x256xf32>
    %222 = vector.shape_cast %221 : vector<1x1x256xf32> to vector<1x256xf32>
    %223 = arith.addf %219, %222 : vector<1x256xf32>
    %224 = tpu.concatenate %211, %223 in 0 : vector<1x256xf32>, vector<1x256xf32> -> vector<2x256xf32>
    %cst_92 = arith.constant dense<0.000000e+00> : vector<2x256xf32>
    %225 = tpu.matmul %195, %0, %cst_92 {dimension_numbers = #tpu.dot_dimension_numbers<[1], [0], [0], [1], [0, 0, 1, 1], [], []>} : vector<2x64xf32>, vector<64x256xf32>, vector<2x256xf32> -> vector<2x256xf32>
    %226 = arith.addf %225, %224 : vector<2x256xf32>
    %227 = arith.mulf %226, %9 : vector<2x256xf32>
    %228 = math.tanh %227 : vector<2x256xf32>
    %cst_93 = arith.constant 1.000000e+00 : f32
    %229 = vector.broadcast %cst_93 : f32 to vector<2x256xf32>
    %230 = arith.addf %228, %229 : vector<2x256xf32>
    %cst_94 = arith.constant 5.000000e-01 : f32
    %231 = vector.broadcast %cst_94 : f32 to vector<2x256xf32>
    %232 = arith.mulf %231, %230 : vector<2x256xf32>
    %233 = arith.select %6, %228, %232 : vector<2x256xi1>, vector<2x256xf32>
    %234 = vector.extract_strided_slice %233 {offsets = [0, 0], sizes = [2, 64], strides = [1, 1]} : vector<2x256xf32> to vector<2x64xf32>
    %235 = vector.extract_strided_slice %233 {offsets = [0, 64], sizes = [2, 64], strides = [1, 1]} : vector<2x256xf32> to vector<2x64xf32>
    %236 = vector.extract_strided_slice %233 {offsets = [0, 128], sizes = [2, 64], strides = [1, 1]} : vector<2x256xf32> to vector<2x64xf32>
    %237 = vector.extract_strided_slice %233 {offsets = [0, 192], sizes = [2, 64], strides = [1, 1]} : vector<2x256xf32> to vector<2x64xf32>
    %238 = arith.mulf %235, %193 : vector<2x64xf32>
    %239 = arith.mulf %234, %236 : vector<2x64xf32>
    %240 = arith.addf %238, %239 : vector<2x64xf32>
    %241 = math.tanh %240 : vector<2x64xf32>
    %242 = arith.mulf %237, %241 : vector<2x64xf32>
    %243 = arith.index_cast %c4_i32 : i32 to index
    %c0_95 = arith.constant 0 : index
    %c0_96 = arith.constant 0 : index
    %244 = vector.load %arg4[%243, %c0_95, %c0_96] : memref<8x2x64xf32, #tpu.memory_space<vmem>>, vector<1x2x64xf32>
    %245 = vector.shape_cast %244 : vector<1x2x64xf32> to vector<2x64xf32>
    %246 = vector.shape_cast %242 : vector<2x64xf32> to vector<1x2x64xf32>
    tpu.vector_store %arg4[%243, %c0_95, %c0_96], %246 {strides = array<i32>} : memref<8x2x64xf32, #tpu.memory_space<vmem>>, vector<1x2x64xf32>,
    %c5_i32 = arith.constant 5 : i32
    %c0_97 = arith.constant 0 : index
    %247 = arith.index_cast %c5_i32 : i32 to index
    %248 = memref.load %arg0[%c0_97, %247] : memref<2x8xi32, #tpu.memory_space<smem>>
    %c7_i32_98 = arith.constant 7 : i32
    %249 = arith.subi %c7_i32_98, %c5_i32 : i32
    %c0_99 = arith.constant 0 : index
    %250 = arith.index_cast %249 : i32 to index
    %251 = memref.load %arg0[%c0_99, %250] : memref<2x8xi32, #tpu.memory_space<smem>>
    %252 = arith.index_cast %248 : i32 to index
    %c0_100 = arith.constant 0 : index
    %c0_101 = arith.constant 0 : index
    %253 = vector.load %arg1[%252, %c0_100, %c0_101] : memref<25x1x256xf32, #tpu.memory_space<vmem>>, vector<1x1x256xf32>
    %254 = vector.shape_cast %253 : vector<1x1x256xf32> to vector<1x256xf32>
    %255 = arith.index_cast %251 : i32 to index
    %c0_102 = arith.constant 0 : index
    %c0_103 = arith.constant 0 : index
    %256 = vector.load %arg2[%255, %c0_102, %c0_103] : memref<25x1x256xf32, #tpu.memory_space<vmem>>, vector<1x1x256xf32>
    %257 = vector.shape_cast %256 : vector<1x1x256xf32> to vector<1x256xf32>
    %258 = arith.addf %254, %257 : vector<1x256xf32>
    %c1_104 = arith.constant 1 : index
    %259 = arith.index_cast %c5_i32 : i32 to index
    %260 = memref.load %arg0[%c1_104, %259] : memref<2x8xi32, #tpu.memory_space<smem>>
    %c7_i32_105 = arith.constant 7 : i32
    %261 = arith.subi %c7_i32_105, %c5_i32 : i32
    %c1_106 = arith.constant 1 : index
    %262 = arith.index_cast %261 : i32 to index
    %263 = memref.load %arg0[%c1_106, %262] : memref<2x8xi32, #tpu.memory_space<smem>>
    %264 = arith.index_cast %260 : i32 to index
    %c0_107 = arith.constant 0 : index
    %c0_108 = arith.constant 0 : index
    %265 = vector.load %arg1[%264, %c0_107, %c0_108] : memref<25x1x256xf32, #tpu.memory_space<vmem>>, vector<1x1x256xf32>
    %266 = vector.shape_cast %265 : vector<1x1x256xf32> to vector<1x256xf32>
    %267 = arith.index_cast %263 : i32 to index
    %c0_109 = arith.constant 0 : index
    %c0_110 = arith.constant 0 : index
    %268 = vector.load %arg2[%267, %c0_109, %c0_110] : memref<25x1x256xf32, #tpu.memory_space<vmem>>, vector<1x1x256xf32>
    %269 = vector.shape_cast %268 : vector<1x1x256xf32> to vector<1x256xf32>
    %270 = arith.addf %266, %269 : vector<1x256xf32>
    %271 = tpu.concatenate %258, %270 in 0 : vector<1x256xf32>, vector<1x256xf32> -> vector<2x256xf32>
    %cst_111 = arith.constant dense<0.000000e+00> : vector<2x256xf32>
    %272 = tpu.matmul %242, %0, %cst_111 {dimension_numbers = #tpu.dot_dimension_numbers<[1], [0], [0], [1], [0, 0, 1, 1], [], []>} : vector<2x64xf32>, vector<64x256xf32>, vector<2x256xf32> -> vector<2x256xf32>
    %273 = arith.addf %272, %271 : vector<2x256xf32>
    %274 = arith.mulf %273, %9 : vector<2x256xf32>
    %275 = math.tanh %274 : vector<2x256xf32>
    %cst_112 = arith.constant 1.000000e+00 : f32
    %276 = vector.broadcast %cst_112 : f32 to vector<2x256xf32>
    %277 = arith.addf %275, %276 : vector<2x256xf32>
    %cst_113 = arith.constant 5.000000e-01 : f32
    %278 = vector.broadcast %cst_113 : f32 to vector<2x256xf32>
    %279 = arith.mulf %278, %277 : vector<2x256xf32>
    %280 = arith.select %6, %275, %279 : vector<2x256xi1>, vector<2x256xf32>
    %281 = vector.extract_strided_slice %280 {offsets = [0, 0], sizes = [2, 64], strides = [1, 1]} : vector<2x256xf32> to vector<2x64xf32>
    %282 = vector.extract_strided_slice %280 {offsets = [0, 64], sizes = [2, 64], strides = [1, 1]} : vector<2x256xf32> to vector<2x64xf32>
    %283 = vector.extract_strided_slice %280 {offsets = [0, 128], sizes = [2, 64], strides = [1, 1]} : vector<2x256xf32> to vector<2x64xf32>
    %284 = vector.extract_strided_slice %280 {offsets = [0, 192], sizes = [2, 64], strides = [1, 1]} : vector<2x256xf32> to vector<2x64xf32>
    %285 = arith.mulf %282, %240 : vector<2x64xf32>
    %286 = arith.mulf %281, %283 : vector<2x64xf32>
    %287 = arith.addf %285, %286 : vector<2x64xf32>
    %288 = math.tanh %287 : vector<2x64xf32>
    %289 = arith.mulf %284, %288 : vector<2x64xf32>
    %290 = arith.index_cast %c5_i32 : i32 to index
    %c0_114 = arith.constant 0 : index
    %c0_115 = arith.constant 0 : index
    %291 = vector.load %arg4[%290, %c0_114, %c0_115] : memref<8x2x64xf32, #tpu.memory_space<vmem>>, vector<1x2x64xf32>
    %292 = vector.shape_cast %291 : vector<1x2x64xf32> to vector<2x64xf32>
    %293 = vector.shape_cast %289 : vector<2x64xf32> to vector<1x2x64xf32>
    tpu.vector_store %arg4[%290, %c0_114, %c0_115], %293 {strides = array<i32>} : memref<8x2x64xf32, #tpu.memory_space<vmem>>, vector<1x2x64xf32>,
    %c6_i32 = arith.constant 6 : i32
    %c0_116 = arith.constant 0 : index
    %294 = arith.index_cast %c6_i32 : i32 to index
    %295 = memref.load %arg0[%c0_116, %294] : memref<2x8xi32, #tpu.memory_space<smem>>
    %c7_i32_117 = arith.constant 7 : i32
    %296 = arith.subi %c7_i32_117, %c6_i32 : i32
    %c0_118 = arith.constant 0 : index
    %297 = arith.index_cast %296 : i32 to index
    %298 = memref.load %arg0[%c0_118, %297] : memref<2x8xi32, #tpu.memory_space<smem>>
    %299 = arith.index_cast %295 : i32 to index
    %c0_119 = arith.constant 0 : index
    %c0_120 = arith.constant 0 : index
    %300 = vector.load %arg1[%299, %c0_119, %c0_120] : memref<25x1x256xf32, #tpu.memory_space<vmem>>, vector<1x1x256xf32>
    %301 = vector.shape_cast %300 : vector<1x1x256xf32> to vector<1x256xf32>
    %302 = arith.index_cast %298 : i32 to index
    %c0_121 = arith.constant 0 : index
    %c0_122 = arith.constant 0 : index
    %303 = vector.load %arg2[%302, %c0_121, %c0_122] : memref<25x1x256xf32, #tpu.memory_space<vmem>>, vector<1x1x256xf32>
    %304 = vector.shape_cast %303 : vector<1x1x256xf32> to vector<1x256xf32>
    %305 = arith.addf %301, %304 : vector<1x256xf32>
    %c1_123 = arith.constant 1 : index
    %306 = arith.index_cast %c6_i32 : i32 to index
    %307 = memref.load %arg0[%c1_123, %306] : memref<2x8xi32, #tpu.memory_space<smem>>
    %c7_i32_124 = arith.constant 7 : i32
    %308 = arith.subi %c7_i32_124, %c6_i32 : i32
    %c1_125 = arith.constant 1 : index
    %309 = arith.index_cast %308 : i32 to index
    %310 = memref.load %arg0[%c1_125, %309] : memref<2x8xi32, #tpu.memory_space<smem>>
    %311 = arith.index_cast %307 : i32 to index
    %c0_126 = arith.constant 0 : index
    %c0_127 = arith.constant 0 : index
    %312 = vector.load %arg1[%311, %c0_126, %c0_127] : memref<25x1x256xf32, #tpu.memory_space<vmem>>, vector<1x1x256xf32>
    %313 = vector.shape_cast %312 : vector<1x1x256xf32> to vector<1x256xf32>
    %314 = arith.index_cast %310 : i32 to index
    %c0_128 = arith.constant 0 : index
    %c0_129 = arith.constant 0 : index
    %315 = vector.load %arg2[%314, %c0_128, %c0_129] : memref<25x1x256xf32, #tpu.memory_space<vmem>>, vector<1x1x256xf32>
    %316 = vector.shape_cast %315 : vector<1x1x256xf32> to vector<1x256xf32>
    %317 = arith.addf %313, %316 : vector<1x256xf32>
    %318 = tpu.concatenate %305, %317 in 0 : vector<1x256xf32>, vector<1x256xf32> -> vector<2x256xf32>
    %cst_130 = arith.constant dense<0.000000e+00> : vector<2x256xf32>
    %319 = tpu.matmul %289, %0, %cst_130 {dimension_numbers = #tpu.dot_dimension_numbers<[1], [0], [0], [1], [0, 0, 1, 1], [], []>} : vector<2x64xf32>, vector<64x256xf32>, vector<2x256xf32> -> vector<2x256xf32>
    %320 = arith.addf %319, %318 : vector<2x256xf32>
    %321 = arith.mulf %320, %9 : vector<2x256xf32>
    %322 = math.tanh %321 : vector<2x256xf32>
    %cst_131 = arith.constant 1.000000e+00 : f32
    %323 = vector.broadcast %cst_131 : f32 to vector<2x256xf32>
    %324 = arith.addf %322, %323 : vector<2x256xf32>
    %cst_132 = arith.constant 5.000000e-01 : f32
    %325 = vector.broadcast %cst_132 : f32 to vector<2x256xf32>
    %326 = arith.mulf %325, %324 : vector<2x256xf32>
    %327 = arith.select %6, %322, %326 : vector<2x256xi1>, vector<2x256xf32>
    %328 = vector.extract_strided_slice %327 {offsets = [0, 0], sizes = [2, 64], strides = [1, 1]} : vector<2x256xf32> to vector<2x64xf32>
    %329 = vector.extract_strided_slice %327 {offsets = [0, 64], sizes = [2, 64], strides = [1, 1]} : vector<2x256xf32> to vector<2x64xf32>
    %330 = vector.extract_strided_slice %327 {offsets = [0, 128], sizes = [2, 64], strides = [1, 1]} : vector<2x256xf32> to vector<2x64xf32>
    %331 = vector.extract_strided_slice %327 {offsets = [0, 192], sizes = [2, 64], strides = [1, 1]} : vector<2x256xf32> to vector<2x64xf32>
    %332 = arith.mulf %329, %287 : vector<2x64xf32>
    %333 = arith.mulf %328, %330 : vector<2x64xf32>
    %334 = arith.addf %332, %333 : vector<2x64xf32>
    %335 = math.tanh %334 : vector<2x64xf32>
    %336 = arith.mulf %331, %335 : vector<2x64xf32>
    %337 = arith.index_cast %c6_i32 : i32 to index
    %c0_133 = arith.constant 0 : index
    %c0_134 = arith.constant 0 : index
    %338 = vector.load %arg4[%337, %c0_133, %c0_134] : memref<8x2x64xf32, #tpu.memory_space<vmem>>, vector<1x2x64xf32>
    %339 = vector.shape_cast %338 : vector<1x2x64xf32> to vector<2x64xf32>
    %340 = vector.shape_cast %336 : vector<2x64xf32> to vector<1x2x64xf32>
    tpu.vector_store %arg4[%337, %c0_133, %c0_134], %340 {strides = array<i32>} : memref<8x2x64xf32, #tpu.memory_space<vmem>>, vector<1x2x64xf32>,
    %c7_i32_135 = arith.constant 7 : i32
    %c0_136 = arith.constant 0 : index
    %341 = arith.index_cast %c7_i32_135 : i32 to index
    %342 = memref.load %arg0[%c0_136, %341] : memref<2x8xi32, #tpu.memory_space<smem>>
    %c7_i32_137 = arith.constant 7 : i32
    %343 = arith.subi %c7_i32_137, %c7_i32_135 : i32
    %c0_138 = arith.constant 0 : index
    %344 = arith.index_cast %343 : i32 to index
    %345 = memref.load %arg0[%c0_138, %344] : memref<2x8xi32, #tpu.memory_space<smem>>
    %346 = arith.index_cast %342 : i32 to index
    %c0_139 = arith.constant 0 : index
    %c0_140 = arith.constant 0 : index
    %347 = vector.load %arg1[%346, %c0_139, %c0_140] : memref<25x1x256xf32, #tpu.memory_space<vmem>>, vector<1x1x256xf32>
    %348 = vector.shape_cast %347 : vector<1x1x256xf32> to vector<1x256xf32>
    %349 = arith.index_cast %345 : i32 to index
    %c0_141 = arith.constant 0 : index
    %c0_142 = arith.constant 0 : index
    %350 = vector.load %arg2[%349, %c0_141, %c0_142] : memref<25x1x256xf32, #tpu.memory_space<vmem>>, vector<1x1x256xf32>
    %351 = vector.shape_cast %350 : vector<1x1x256xf32> to vector<1x256xf32>
    %352 = arith.addf %348, %351 : vector<1x256xf32>
    %c1_143 = arith.constant 1 : index
    %353 = arith.index_cast %c7_i32_135 : i32 to index
    %354 = memref.load %arg0[%c1_143, %353] : memref<2x8xi32, #tpu.memory_space<smem>>
    %c7_i32_144 = arith.constant 7 : i32
    %355 = arith.subi %c7_i32_144, %c7_i32_135 : i32
    %c1_145 = arith.constant 1 : index
    %356 = arith.index_cast %355 : i32 to index
    %357 = memref.load %arg0[%c1_145, %356] : memref<2x8xi32, #tpu.memory_space<smem>>
    %358 = arith.index_cast %354 : i32 to index
    %c0_146 = arith.constant 0 : index
    %c0_147 = arith.constant 0 : index
    %359 = vector.load %arg1[%358, %c0_146, %c0_147] : memref<25x1x256xf32, #tpu.memory_space<vmem>>, vector<1x1x256xf32>
    %360 = vector.shape_cast %359 : vector<1x1x256xf32> to vector<1x256xf32>
    %361 = arith.index_cast %357 : i32 to index
    %c0_148 = arith.constant 0 : index
    %c0_149 = arith.constant 0 : index
    %362 = vector.load %arg2[%361, %c0_148, %c0_149] : memref<25x1x256xf32, #tpu.memory_space<vmem>>, vector<1x1x256xf32>
    %363 = vector.shape_cast %362 : vector<1x1x256xf32> to vector<1x256xf32>
    %364 = arith.addf %360, %363 : vector<1x256xf32>
    %365 = tpu.concatenate %352, %364 in 0 : vector<1x256xf32>, vector<1x256xf32> -> vector<2x256xf32>
    %cst_150 = arith.constant dense<0.000000e+00> : vector<2x256xf32>
    %366 = tpu.matmul %336, %0, %cst_150 {dimension_numbers = #tpu.dot_dimension_numbers<[1], [0], [0], [1], [0, 0, 1, 1], [], []>} : vector<2x64xf32>, vector<64x256xf32>, vector<2x256xf32> -> vector<2x256xf32>
    %367 = arith.addf %366, %365 : vector<2x256xf32>
    %368 = arith.mulf %367, %9 : vector<2x256xf32>
    %369 = math.tanh %368 : vector<2x256xf32>
    %cst_151 = arith.constant 1.000000e+00 : f32
    %370 = vector.broadcast %cst_151 : f32 to vector<2x256xf32>
    %371 = arith.addf %369, %370 : vector<2x256xf32>
    %cst_152 = arith.constant 5.000000e-01 : f32
    %372 = vector.broadcast %cst_152 : f32 to vector<2x256xf32>
    %373 = arith.mulf %372, %371 : vector<2x256xf32>
    %374 = arith.select %6, %369, %373 : vector<2x256xi1>, vector<2x256xf32>
    %375 = vector.extract_strided_slice %374 {offsets = [0, 0], sizes = [2, 64], strides = [1, 1]} : vector<2x256xf32> to vector<2x64xf32>
    %376 = vector.extract_strided_slice %374 {offsets = [0, 64], sizes = [2, 64], strides = [1, 1]} : vector<2x256xf32> to vector<2x64xf32>
    %377 = vector.extract_strided_slice %374 {offsets = [0, 128], sizes = [2, 64], strides = [1, 1]} : vector<2x256xf32> to vector<2x64xf32>
    %378 = vector.extract_strided_slice %374 {offsets = [0, 192], sizes = [2, 64], strides = [1, 1]} : vector<2x256xf32> to vector<2x64xf32>
    %379 = arith.mulf %376, %334 : vector<2x64xf32>
    %380 = arith.mulf %375, %377 : vector<2x64xf32>
    %381 = arith.addf %379, %380 : vector<2x64xf32>
    %382 = math.tanh %381 : vector<2x64xf32>
    %383 = arith.mulf %378, %382 : vector<2x64xf32>
    %384 = arith.index_cast %c7_i32_135 : i32 to index
    %c0_153 = arith.constant 0 : index
    %c0_154 = arith.constant 0 : index
    %385 = vector.load %arg4[%384, %c0_153, %c0_154] : memref<8x2x64xf32, #tpu.memory_space<vmem>>, vector<1x2x64xf32>
    %386 = vector.shape_cast %385 : vector<1x2x64xf32> to vector<2x64xf32>
    %387 = vector.shape_cast %383 : vector<2x64xf32> to vector<1x2x64xf32>
    tpu.vector_store %arg4[%384, %c0_153, %c0_154], %387 {strides = array<i32>} : memref<8x2x64xf32, #tpu.memory_space<vmem>>, vector<1x2x64xf32>,
    %c8_i32 = arith.constant 8 : i32
    return
  }
}

</mosaic_0001>

<bundles_post_ra>
// kernel: aa_bilstm_forward.1
= control target key start
LH: loop header
LB: loop body
LE: loop exit
PB: predicated region body
PF: predicated region fallthrough
CT: control target
= control target key end

     0   :  { %9 = vsyncpa [#allocation4], 0  ;;  %s1984_s0 = inlined_call_operand.vmem [shape: s32[2,8], index: 0, kind: input, shape index: {}]   ;;  %s1985_s1 = inlined_call_operand.hbm [shape: f32[25,1,256], index: 1, kind: input, shape index: {}]   ;;  %s1986_s2 = inlined_call_operand.hbm [shape: f32[25,1,256], index: 2, kind: input, shape index: {}]   ;;  %s1987_s3 = inlined_call_operand.hbm [shape: f32[64,256], index: 3, kind: input, shape index: {}]   ;;  %s1988_s4 = inlined_call_operand.vmem [shape: f32[8,2,64], index: 4, kind: output, shape index: {}]  }
   0x1   :  { %10 = vsyncpa [#allocation3], 0 }
   0x2   :  { %11 = vsyncpa [#allocation7], 0  ;;  %s18_s17 = sshll.u32 %s1984_s0, 4  ;;  %s1505_s18 = smov [#allocation6]   ;;  %s19_s17 = int_to_ptr.vmem [resolvable:$true] %s18_s17 }
   0x3   :  { %s39_s19 = sshll.u32 %s1505_s18, 4  ;;  %s40_s19 = int_to_ptr.vmem [resolvable:$true] %s39_s19 }
   0x4   :  { %s1435_s20 = scalar_lea.vmem %s40_s19, 800  ;;  %p1440_p1 = scmp.lt.s32.totalorder %s40_s19, %s40_s19 }
   0x5   :  { %p1436_p0 = scmp.ne.s32.totalorder %s40_s19, %s1435_s20  ;;  %p1441_p2 = scmp.lt.s32.totalorder %s1435_s20, %s1435_s20 }
   0x7   :  { %p1442_p3 = por %p1441_p2, %p1440_p1 }
   0x9   :  { %p1443_p4 = pnand %p1442_p3, %p1436_p0 }
   0xb   :  { %1446 = shalt.err (!%p1443_p4)
}
   0xc   :  { %s1506_s21 = smov 32   ;;  %s1507_s22 = smov 2  }
   0xd   :  { %45 = dma.hbm_to_vmem [thread:$0]  %s1986_s2, 800, %s40_s19, [#allocation7], %s1506_s21, %s1506_s21, %s1507_s22  }
   0xe   :  { %s1447_s25 = scalar_lea.vmem %s19_s17, 32  ;;  %p1452_p6 = scmp.lt.s32.totalorder %s19_s17, %s19_s17 }
   0xf   :  { %p1448_p5 = scmp.ne.s32.totalorder %s19_s17, %s1447_s25  ;;  %p1453_p7 = scmp.lt.s32.totalorder %s1447_s25, %s1447_s25 }
  0x11   :  { %p1454_p8 = por %p1453_p7, %p1452_p6 }
  0x13   :  { %p1455_p9 = pnand %p1454_p8, %p1448_p5 }
  0x15   :  { %1458 = shalt.err (!%p1455_p9)
}
  0x16   :  { %s1508_s0 = smov [#allocation2]   ;;  %s1509_s26 = smov [#allocation5]  }
  0x17   :  { %21 = dma.vmem_to_smem %s19_s17, 32, %s1508_s0, [#allocation4]  }
  0x18   :  { %s27_s27 = sshll.u32 %s1509_s26, 4  ;;  %s1510_s28 = smov [#allocation8]   ;;  %s28_s27 = int_to_ptr.vmem [resolvable:$true] %s27_s27 }
  0x19   :  { %s51_s29 = sshll.u32 %s1510_s28, 4  ;;  %s1467_s30 = scalar_lea.vmem %s28_s27, 800  ;;  %s52_s29 = int_to_ptr.vmem [resolvable:$true] %s51_s29 }
  0x1a   :  { %p1468_p10 = scmp.ne.s32.totalorder %s28_s27, %s1467_s30  ;;  %p1472_p11 = scmp.lt.s32.totalorder %s28_s27, %s28_s27 }
  0x1b   :  { %p1473_p12 = scmp.lt.s32.totalorder %s1467_s30, %s1467_s30 }
  0x1d   :  { %p1474_p13 = por %p1473_p12, %p1472_p11 }
  0x1f   :  { %p1475_p0 = pnand %p1474_p13, %p1468_p10 }
  0x21   :  { %1478 = shalt.err (!%p1475_p0)
}
  0x22   :  { %33 = dma.hbm_to_vmem [thread:$0]  %s1985_s1, 800, %s28_s27, [#allocation3], %s1506_s21, %s1506_s21, %s1507_s22  }
  0x23   :  { %s1487_s6 = scalar_lea.vmem %s52_s29, 2048  ;;  %p1492_p2 = scmp.lt.s32.totalorder %s52_s29, %s52_s29 }
  0x24   :  { %p1488_p1 = scmp.ne.s32.totalorder %s52_s29, %s1487_s6  ;;  %p1493_p3 = scmp.lt.s32.totalorder %s1487_s6, %s1487_s6 }
  0x26   :  { %p1494_p4 = por %p1493_p3, %p1492_p2 }
  0x28   :  { %p1495_p5 = pnand %p1494_p4, %p1488_p1 }
  0x2a   :  { %1498 = shalt.err (!%p1495_p5)
}
  0x2b   :  { %s1511_s7 = smov 256   ;;  %s1512_s8 = smov 16  }
  0x2c   :  { %57 = dma.hbm_to_vmem [thread:$0]  %s1987_s3, 2048, %s52_s29, [#allocation7], %s1511_s7, %s1511_s7, %s1512_s8  }
  0x2d   :  { %1499 = dma.done.wait [#allocation4], 32  }
  0x2e   :  { %1500 = vsyncadd [#allocation4], 4294967264 }
  0x2f   :  { %1501 = dma.done.wait [#allocation3], 800  }
  0x30   :  { %1502 = vsyncadd [#allocation3], 4294966496 }
  0x31   :  { %1503 = dma.done.wait [#allocation7], 2848  }
  0x32   :  { %1504 = vsyncadd [#allocation7], 4294964448 }
  0x33   :  { %70 = sfence }
  0x34   :  { %v1553_v0 = vld [vmem:[#allocation8 + $0x78] sm:$0xff]  ;;  %v1555_v1 = vld [vmem:[#allocation8 + $0x70] sm:$0xff]  ;;  %v1557_v2 = vld [vmem:[#allocation8 + $0x68] sm:$0xff]  ;;  %v1513_v4 = vmov 0.0   ;;  %s1639_s1 = sld [smem:[#allocation2]]  ;;  %v87_v17 = vlaneseq  ;;  %vm138_vm0 = vcmask 1040384  }
  0x35   :  { %161 = vmatprep.subr.mxu0 %v1553_v0  ;;  %v1560_v3 = vld [vmem:[#allocation8 + $0x60] sm:$0xff]  ;;  %209 = vmatprep.mubr.f32.mxu0 %v1513_v4  ;;  %v1564_v5 = vld [vmem:[#allocation8 + $0x58] sm:$0xff]  ;;  %v1568_v6 = vld [vmem:[#allocation8 + $0x50] sm:$0xff]  ;;  %s1641_s3 = sld [smem:[#allocation2 + $0x7]]  ;;  %v1514_v37 = vmov 0.5   ;;  %s1515_s21 = smov 64  }
  0x36   :  { %162 = vmatpush1.msra.mxu0 %v1555_v1  ;;  %301 = vmatprep.subr.mxu1 %v1553_v0  ;;  %v1572_v7 = vld [vmem:[#allocation8 + $0x48] sm:$0xff]  ;;  %v1576_v8 = vld [vmem:[#allocation8 + $0x40] sm:$0xff]  ;;  %v1580_v9 = vld [vmem:[#allocation8 + $0x38] sm:$0xff]  ;;  %s1643_s11 = sld [smem:[#allocation2 + $0x80]]  ;;  %v118_v19 = vshrl.u32 %v87_v17, 7  ;;  %v88_v26 = vand.u32 127, %v87_v17 }
  0x37   :  { %163 = vmatprep.subr.mxu0 %v1557_v2  ;;  %302 = vmatpush1.msra.mxu1 %v1555_v1  ;;  %v1584_v10 = vld [vmem:[#allocation8 + $0x30] sm:$0xff]  ;;  %v1588_v11 = vld [vmem:[#allocation8 + $0x28] sm:$0xff]  ;;  %v1592_v12 = vld [vmem:[#allocation8 + $0x20] sm:$0xff]  ;;  %s1645_s12 = sld [smem:[#allocation2 + $0x87]]  ;;  %vm239_vm2 = vcmask 517120   ;;  %vm141_vm3 = vcmask 523264  }
  0x38   :  { %164 = vmatpush1.msra.mxu0 %v1560_v3  ;;  %303 = vmatprep.subr.mxu1 %v1557_v2  ;;  %v1596_v13 = vld [vmem:[#allocation8 + $0x18] sm:$0xff]  ;;  %v1600_v14 = vld [vmem:[#allocation8 + $0x10] sm:$0xff]  ;;  %v1604_v15 = vld [vmem:[#allocation8 + $0x8] sm:$0xff]  ;;  %v1659_v25 = vsub.s32 0, %v118_v19  ;;  %v1661_v27 = vsub.s32 1, %v118_v19  ;;  %v1665_v30 = vadd.s32 128, %v88_v26 }
  0x39   :  { %165 = vmatprep.subr.mxu0 %v1564_v5  ;;  %304 = vmatpush1.msra.mxu1 %v1560_v3  ;;  %v1608_v16 = vld [vmem:[#allocation8] sm:$0xff]  ;;  %s1706_s24 = sld [smem:[#allocation2 + $0x1]] }
  0x3a   :  { %166 = vmatpush1.msra.mxu0 %v1568_v6  ;;  %305 = vmatprep.subr.mxu1 %v1564_v5  ;;  %s1991_s13 = sshll.u32 %s1639_s1, 1  ;;  %vm93_vm1 = vcmp.lt.s32.totalorder %v1665_v30, 192  ;;  %s1708_s25 = sld [smem:[#allocation2 + $0x6]] }
  0x3b   :  { %167 = vmatprep.subr.mxu0 %v1572_v7  ;;  %306 = vmatpush1.msra.mxu1 %v1568_v6  ;;  %s1992_s14 = sshll.u32 %s1641_s3, 1  ;;  %s101_s17 = scalar_lea.vmem [#allocation5], %s1991_s13  ;;  %v1674_v38 = vsel %vm93_vm1, 1.0, %v1514_v37 }
  0x3c   :  { %168 = vmatpush1.msra.mxu0 %v1576_v8  ;;  %307 = vmatprep.subr.mxu1 %v1572_v7  ;;  %s1989_s15 = sshll.u32 %s1643_s11, 1  ;;  %v102_v18 = vld [vmem:[%s101_s17] sm:$0x3]  ;;  %s104_s18 = scalar_lea.vmem [#allocation6], %s1992_s14 }
  0x3d   :  { %169 = vmatprep.subr.mxu0 %v1580_v9  ;;  %308 = vmatpush1.msra.mxu1 %v1576_v8  ;;  %s1990_s16 = sshll.u32 %s1645_s12, 1  ;;  %v105_v20 = vld [vmem:[%s104_s18] sm:$0x3]  ;;  %s110_s19 = scalar_lea.vmem [#allocation5], %s1989_s15 }
  0x3e   :  { %170 = vmatpush1.msra.mxu0 %v1584_v10  ;;  %309 = vmatprep.subr.mxu1 %v1580_v9  ;;  %v111_v21 = vld [vmem:[%s110_s19] sm:$0x3]  ;;  %s113_s20 = scalar_lea.vmem [#allocation6], %s1990_s16  ;;  %v106_v23 = vadd.f32 %v105_v20, %v102_v18  ;;  %s1710_s0 = sld [smem:[#allocation2 + $0x81]] }
  0x3f   :  { %171 = vmatprep.subr.mxu0 %v1588_v11  ;;  %310 = vmatpush1.msra.mxu1 %v1584_v10  ;;  %v114_v22 = vld [vmem:[%s113_s20] sm:$0x3]  ;;  %s1712_s26 = sld [smem:[#allocation2 + $0x86]]  ;;  %s1995_s27 = sshll.u32 %s1706_s24, 1 }
  0x40   :  { %172 = vmatpush1.msra.mxu0 %v1592_v12  ;;  %311 = vmatprep.subr.mxu1 %v1588_v11  ;;  %v115_v24 = vadd.f32 %v114_v22, %v111_v21  ;;  %v120_v28 = vrot.slane %v106_v23, %v1659_v25  ;;  %v124_v31 = vrot.slane %v106_v23, %v1661_v27  ;;  %s1302_s28 = sshll.u32 %s1708_s25, 1  ;;  %s244_s2 = scalar_lea.vmem [#allocation5], %s1995_s27 }
  0x41   :  { %173 = vmatprep.subr.mxu0 %v1596_v13  ;;  %312 = vmatpush1.msra.mxu1 %v1592_v12  ;;  %v245_v57 = vld [vmem:[%s244_s2] sm:$0x3]  ;;  %s247_s5 = scalar_lea.vmem [#allocation6], %s1302_s28  ;;  %s1763_s10 = sld [smem:[#allocation2 + $0x2]] }
  0x42   :  { %174 = vmatpush1.msra.mxu0 %v1600_v14  ;;  %313 = vmatprep.subr.mxu1 %v1596_v13  ;;  %v131_v29 = vrot.slane %v115_v24, %v1659_v25  ;;  %v135_v32 = vrot.slane %v115_v24, %v1661_v27  ;;  %v248_v58 = vld [vmem:[%s247_s5] sm:$0x3]  ;;  %s1765_s17 = sld [smem:[#allocation2 + $0x5]] }
  0x43   :  { %175 = vmatprep.subr.mxu0 %v1604_v15  ;;  %314 = vmatpush1.msra.mxu1 %v1600_v14  ;;  %v249_v61 = vadd.f32 %v248_v58, %v245_v57  ;;  %s1767_s18 = sld [smem:[#allocation2 + $0x82]] }
  0x44   :  { %176 = vmatpush1.msra.mxu0 %v1608_v16  ;;  %315 = vmatprep.subr.mxu1 %v1604_v15  ;;  %v139_v33 = vsel %vm138_vm0, %v120_v28, %v131_v29  ;;  %v140_v35 = vsel %vm138_vm0, %v124_v31, %v135_v32  ;;  %s1993_s29 = sshll.u32 %s1710_s0, 1  ;;  %s1769_s19 = sld [smem:[#allocation2 + $0x85]] }
  0x45   :  { %210 = vmatmul.mubr.f32.vlgmr.msra.gmra.mxu0 %v1513_v4  ;;  %316 = vmatpush1.msra.mxu1 %v1608_v16  ;;  %s1994_s30 = sshll.u32 %s1712_s26, 1  ;;  %s253_s6 = scalar_lea.vmem [#allocation5], %s1993_s29  ;;  %v263_v63 = vrot.slane %v249_v61, %v1659_v25  ;;  %v267_v18 = vrot.slane %v249_v61, %v1661_v27 }
  0x46   :  { %349 = vmatprep.mubr.f32.mxu1 %v1513_v4  ;;  %441 = vmatprep.subr.mxu0 %v1553_v0  ;;  %v254_v59 = vld [vmem:[%s253_s6] sm:$0x3]  ;;  %s256_s7 = scalar_lea.vmem [#allocation6], %s1994_s30  ;;  %s1826_s9 = sld [smem:[#allocation2 + $0x84]] }
  0x47   :  { %442 = vmatpush1.msra.mxu0 %v1555_v1  ;;  %489 = vmatprep.mubr.f32.mxu0 %v1513_v4  ;;  %v257_v60 = vld [vmem:[%s256_s7] sm:$0x3]  ;;  %s1311_s20 = sshll.u32 %s1763_s10, 1 }
  0x48   :  { %443 = vmatprep.subr.mxu0 %v1557_v2  ;;  %581 = vmatprep.subr.mxu1 %v1553_v0  ;;  %v258_v62 = vadd.f32 %v257_v60, %v254_v59  ;;  %s1312_s22 = sshll.u32 %s1765_s17, 1  ;;  %s384_s5 = scalar_lea.vmem [#allocation5], %s1311_s20 }
  0x49   :  { %444 = vmatpush1.msra.mxu0 %v1560_v3  ;;  %s1315_s23 = sshll.u32 %s1767_s18, 1  ;;  %s387_s6 = scalar_lea.vmem [#allocation6], %s1312_s22 }
  0x4a   :  { %445 = vmatprep.subr.mxu0 %v1564_v5  ;;  %v274_v17 = vrot.slane %v258_v62, %v1659_v25  ;;  %v278_v19 = vrot.slane %v258_v62, %v1661_v27  ;;  %s1316_s2 = sshll.u32 %s1769_s19, 1  ;;  %s393_s7 = scalar_lea.vmem [#allocation5], %s1315_s23 }
  0x4b   :  { %446 = vmatpush1.msra.mxu0 %v1568_v6  ;;  %s396_s8 = scalar_lea.vmem [#allocation6], %s1316_s2  ;;  %s944_s18 = scalar_lea.vmem [#allocation5], %s1302_s28 }
  0x4c   :  { %447 = vmatprep.subr.mxu0 %v1572_v7  ;;  %v281_v20 = vsel %vm138_vm0, %v263_v63, %v274_v17  ;;  %v282_v22 = vsel %vm138_vm0, %v267_v18, %v278_v19  ;;  %s1326_s13 = sshll.u32 %s1826_s9, 1  ;;  %s1996_s19 = sshll.u32 %s1706_s24, 1 }
  0x4d   :  { %448 = vmatpush1.msra.mxu0 %v1576_v8  ;;  %s536_s27 = scalar_lea.vmem [#allocation6], %s1326_s13  ;;  %s2000_s28 = sshll.u32 %s1639_s1, 1 }
  0x4e   :  { %449 = vmatprep.subr.mxu0 %v1580_v9 }
  0x4f   :  { %450 = vmatpush1.msra.mxu0 %v1584_v10 }
  0x50   :  { %451 = vmatprep.subr.mxu0 %v1588_v11 }
  0x51   :  { %452 = vmatpush1.msra.mxu0 %v1592_v12 }
  0x52   :  { %453 = vmatprep.subr.mxu0 %v1596_v13 }
  0x53   :  { %454 = vmatpush1.msra.mxu0 %v1600_v14 }
  0x54   :  { %455 = vmatprep.subr.mxu0 %v1604_v15 }
  0x55   :  { %456 = vmatpush1.msra.mxu0 %v1608_v16 }
  0x56   :  { %721 = vmatprep.subr.mxu0 %v1553_v0 }
 0x105   :  { %v211_v34 = vpop.f32.mrf.mxu0 }
 0x106   :  { %v212_v36 = vadd.f32 %v211_v34, %v139_v33 }
 0x107   :  { %v213_v39 = vpop.f32.mrf.mxu0 }
 0x108   :  { %v216_v40 = vmul.f32 0.5, %v212_v36  ;;  %v214_v41 = vadd.f32 %v213_v39, %v140_v35 }
 0x10a   :  { %1379 = vtanh.f32 %v216_v40  ;;  %v217_v42 = vmul.f32 %v214_v41, %v1674_v38 }
 0x10c   :  { %1381 = vtanh.f32 %v217_v42 }
 0x117   :  { %v1380_v43 = vpop.eup %1379 }
 0x118   :  { %v220_v45 = vadd.f32 1.0, %v1380_v43 }
 0x119   :  { %v1382_v44 = vpop.eup %1381 }
 0x11a   :  { %v221_v46 = vadd.f32 1.0, %v1382_v44  ;;  %v222_v48 = vmul.f32 0.5, %v220_v45 }
 0x11c   :  { %v223_v47 = vmul.f32 0.5, %v221_v46  ;;  %v226_v51 = vmul.f32 0.0, %v222_v48  ;;  %v385_v46 = vld [vmem:[%s384_s5] sm:$0x3] }
 0x11e   :  { %v225_v49 = vsel %vm93_vm1, %v1382_v44, %v223_v47  ;;  %v388_v47 = vld [vmem:[%s387_s6] sm:$0x3]  ;;  %s1820_s6 = sld [smem:[#allocation2 + $0x3]] }
 0x11f   :  { %v227_v50 = vmul.f32 %v225_v49, %v222_v48  ;;  %v394_v48 = vld [vmem:[%s393_s7] sm:$0x3]  ;;  %s1822_s7 = sld [smem:[#allocation2 + $0x4]] }
 0x121   :  { %229 = vrot.lane.b32.xlu0 %v227_v50, %s1515_s21  ;;  %v389_v50 = vadd.f32 %v388_v47, %v385_v46 }
 0x124   :  { %s1321_s5 = sshll.u32 %s1820_s6, 1  ;;  %s807_s6 = scalar_lea.vmem [#allocation6], %s1311_s20 }
 0x125   :  { %s1322_s15 = sshll.u32 %s1822_s7, 1  ;;  %s524_s14 = scalar_lea.vmem [#allocation5], %s1321_s5 }
 0x126   :  { %s527_s29 = scalar_lea.vmem [#allocation6], %s1322_s15  ;;  %s813_s7 = scalar_lea.vmem [#allocation5], %s1316_s2 }
 0x127   :  { %s947_s20 = scalar_lea.vmem [#allocation6], %s1996_s19  ;;  %s1998_s2 = sshll.u32 %s1710_s0, 1 }
 0x128   :  { %s956_s9 = scalar_lea.vmem [#allocation6], %s1998_s2  ;;  %s1999_s0 = sshll.u32 %s1641_s3, 1 }
 0x193   :  { %v230_v52 = vpop.permute.xlu0 %229 }
 0x194   :  { %v1680_v53 = vadd.f32 %v230_v52, %v226_v51  ;;  %v403_v52 = vrot.slane %v389_v50, %v1659_v25 }
 0x196   :  { %1383 = vtanh.f32 %v1680_v53 }
 0x1a3   :  { %v1384_v54 = vpop.eup %1383 }
 0x1a4   :  { %v234_v55 = vmul.f32 %v1384_v54, %v225_v49  ;;  %v397_v49 = vld [vmem:[%s396_s8] sm:$0x3]  ;;  %v407_v54 = vrot.slane %v389_v50, %v1661_v27  ;;  %s1824_s8 = sld [smem:[#allocation2 + $0x83]] }
 0x1a5   :  { %v398_v51 = vadd.f32 %v397_v49, %v394_v48 }
 0x1a6   :  { %236 = vrot.lane.b32.xlu0 %v234_v55, %s1515_s21 }
 0x1a7   :  { %v418_v55 = vrot.slane %v398_v51, %v1661_v27 }
 0x1a9   :  { %v422_v58 = vsel %vm138_vm0, %v407_v54, %v418_v55 }
 0x1aa   :  { %s1325_s16 = sshll.u32 %s1824_s8, 1  ;;  %s816_s8 = scalar_lea.vmem [#allocation6], %s1315_s23 }
 0x1ab   :  { %s533_s30 = scalar_lea.vmem [#allocation5], %s1325_s16 }
 0x218   :  { %v237_v56 = vpop.permute.xlu0 %236 }
 0x219   :  { %240 = vst.msk [vmem:[%s1988_s4] sm:$0x3] %vm239_vm2, %v237_v56  ;;  %1307 = vmatmul.mubr.msk.f32.vlgmr.msra.gmra.mxu1 %vm141_vm3, %v237_v56 }
 0x21a   :  { %582 = vmatpush1.msra.mxu1 %v1555_v1  ;;  %629 = vmatprep.mubr.f32.mxu1 %v1513_v4 }
 0x21b   :  { %583 = vmatprep.subr.mxu1 %v1557_v2 }
 0x21c   :  { %584 = vmatpush1.msra.mxu1 %v1560_v3 }
 0x21d   :  { %585 = vmatprep.subr.mxu1 %v1564_v5 }
 0x21e   :  { %586 = vmatpush1.msra.mxu1 %v1568_v6 }
 0x21f   :  { %587 = vmatprep.subr.mxu1 %v1572_v7 }
 0x220   :  { %588 = vmatpush1.msra.mxu1 %v1576_v8 }
 0x221   :  { %589 = vmatprep.subr.mxu1 %v1580_v9 }
 0x222   :  { %590 = vmatpush1.msra.mxu1 %v1584_v10 }
 0x223   :  { %591 = vmatprep.subr.mxu1 %v1588_v11 }
 0x224   :  { %592 = vmatpush1.msra.mxu1 %v1592_v12 }
 0x225   :  { %593 = vmatprep.subr.mxu1 %v1596_v13 }
 0x226   :  { %594 = vmatpush1.msra.mxu1 %v1600_v14 }
 0x227   :  { %595 = vmatprep.subr.mxu1 %v1604_v15 }
 0x228   :  { %596 = vmatpush1.msra.mxu1 %v1608_v16 }
 0x229   :  { %861 = vmatprep.subr.mxu1 %v1553_v0 }
 0x2d9   :  { %v351_v21 = vpop.f32.mrf.mxu1 }
 0x2da   :  { %v352_v23 = vadd.f32 %v351_v21, %v281_v20 }
 0x2db   :  { %v353_v24 = vpop.f32.mrf.mxu1 }
 0x2dc   :  { %v356_v26 = vmul.f32 0.5, %v352_v23  ;;  %v354_v28 = vadd.f32 %v353_v24, %v282_v22 }
 0x2de   :  { %1385 = vtanh.f32 %v356_v26  ;;  %v357_v29 = vmul.f32 %v354_v28, %v1674_v38 }
 0x2e0   :  { %1387 = vtanh.f32 %v357_v29 }
 0x2eb   :  { %v1386_v31 = vpop.eup %1385 }
 0x2ec   :  { %v360_v33 = vadd.f32 1.0, %v1386_v31 }
 0x2ed   :  { %v1388_v32 = vpop.eup %1387 }
 0x2ee   :  { %v361_v34 = vadd.f32 1.0, %v1388_v32  ;;  %v362_v36 = vmul.f32 0.5, %v360_v33 }
 0x2f0   :  { %v363_v35 = vmul.f32 0.5, %v361_v34  ;;  %v366_v40 = vmul.f32 %v362_v36, %v1680_v53  ;;  %v414_v53 = vrot.slane %v398_v51, %v1659_v25  ;;  %v528_v34 = vld [vmem:[%s527_s29] sm:$0x3]  ;;  %s664_s29 = scalar_lea.vmem [#allocation5], %s1322_s15 }
 0x2f2   :  { %v365_v37 = vsel %vm93_vm1, %v1388_v32, %v363_v35  ;;  %v421_v56 = vsel %vm138_vm0, %v403_v52, %v414_v53  ;;  %v534_v35 = vld [vmem:[%s533_s30] sm:$0x3]  ;;  %s667_s30 = scalar_lea.vmem [#allocation6], %s1321_s5  ;;  %s1087_s5 = scalar_lea.vmem [#allocation6], %s2000_s28 }
 0x2f3   :  { %v367_v39 = vmul.f32 %v365_v37, %v362_v36  ;;  %v537_v36 = vld [vmem:[%s536_s27] sm:$0x3]  ;;  %s676_s27 = scalar_lea.vmem [#allocation6], %s1325_s16  ;;  %s804_s16 = scalar_lea.vmem [#allocation5], %s1312_s22 }
 0x2f4   :  { %s1997_s22 = sshll.u32 %s1712_s26, 1  ;;  %s1084_s26 = scalar_lea.vmem [#allocation5], %s1999_s0 }
 0x2f5   :  { %369 = vrot.lane.b32.xlu1 %v367_v39, %s1515_s21  ;;  %v538_v39 = vadd.f32 %v537_v36, %v534_v35  ;;  %s953_s23 = scalar_lea.vmem [#allocation5], %s1997_s22 }
 0x367   :  { %v370_v41 = vpop.permute.xlu1 %369 }
 0x368   :  { %v1737_v42 = vadd.f32 %v370_v41, %v366_v40  ;;  %v554_v41 = vrot.slane %v538_v39, %v1659_v25 }
 0x36a   :  { %1389 = vtanh.f32 %v1737_v42 }
 0x377   :  { %v1390_v43 = vpop.eup %1389 }
 0x378   :  { %v374_v44 = vmul.f32 %v1390_v43, %v365_v37  ;;  %v558_v43 = vrot.slane %v538_v39, %v1661_v27 }
 0x37a   :  { %376 = vrot.lane.b32.xlu1 %v374_v44, %s1515_s21 }
 0x3ec   :  { %v377_v45 = vpop.permute.xlu1 %376 }
 0x3ed   :  { %1308 = vst.msk [vmem:[%s1988_s4 + $0x2] sm:$0x3] %vm239_vm2, %v377_v45  ;;  %1317 = vmatmul.mubr.msk.f32.vlgmr.msra.gmra.mxu0 %vm141_vm3, %v377_v45 }
 0x3ee   :  { %722 = vmatpush1.msra.mxu0 %v1555_v1  ;;  %769 = vmatprep.mubr.f32.mxu0 %v1513_v4 }
 0x3ef   :  { %723 = vmatprep.subr.mxu0 %v1557_v2 }
 0x3f0   :  { %724 = vmatpush1.msra.mxu0 %v1560_v3 }
 0x3f1   :  { %725 = vmatprep.subr.mxu0 %v1564_v5 }
 0x3f2   :  { %726 = vmatpush1.msra.mxu0 %v1568_v6 }
 0x3f3   :  { %727 = vmatprep.subr.mxu0 %v1572_v7 }
 0x3f4   :  { %728 = vmatpush1.msra.mxu0 %v1576_v8 }
 0x3f5   :  { %729 = vmatprep.subr.mxu0 %v1580_v9 }
 0x3f6   :  { %730 = vmatpush1.msra.mxu0 %v1584_v10 }
 0x3f7   :  { %731 = vmatprep.subr.mxu0 %v1588_v11 }
 0x3f8   :  { %732 = vmatpush1.msra.mxu0 %v1592_v12 }
 0x3f9   :  { %733 = vmatprep.subr.mxu0 %v1596_v13 }
 0x3fa   :  { %734 = vmatpush1.msra.mxu0 %v1600_v14 }
 0x3fb   :  { %735 = vmatprep.subr.mxu0 %v1604_v15 }
 0x3fc   :  { %736 = vmatpush1.msra.mxu0 %v1608_v16 }
 0x3fd   :  { %1001 = vmatprep.subr.mxu0 %v1553_v0 }
 0x4ad   :  { %v491_v57 = vpop.f32.mrf.mxu0 }
 0x4ae   :  { %v492_v59 = vadd.f32 %v491_v57, %v421_v56 }
 0x4af   :  { %v493_v60 = vpop.f32.mrf.mxu0 }
 0x4b0   :  { %v496_v61 = vmul.f32 0.5, %v492_v59  ;;  %v494_v62 = vadd.f32 %v493_v60, %v422_v58 }
 0x4b2   :  { %1391 = vtanh.f32 %v496_v61  ;;  %v497_v63 = vmul.f32 %v494_v62, %v1674_v38 }
 0x4b4   :  { %1393 = vtanh.f32 %v497_v63 }
 0x4bf   :  { %v1392_v17 = vpop.eup %1391 }
 0x4c0   :  { %v500_v19 = vadd.f32 1.0, %v1392_v17 }
 0x4c1   :  { %v1394_v18 = vpop.eup %1393 }
 0x4c2   :  { %v501_v20 = vadd.f32 1.0, %v1394_v18  ;;  %v502_v22 = vmul.f32 0.5, %v500_v19  ;;  %v665_v19 = vld [vmem:[%s664_s29] sm:$0x3]  ;;  %s2001_s29 = sshll.u32 %s1645_s12, 1 }
 0x4c4   :  { %v503_v21 = vmul.f32 0.5, %v501_v20  ;;  %v506_v26 = vmul.f32 %v502_v22, %v1737_v42  ;;  %v668_v20 = vld [vmem:[%s667_s30] sm:$0x3]  ;;  %s1093_s30 = scalar_lea.vmem [#allocation5], %s2001_s29 }
 0x4c6   :  { %v505_v23 = vsel %vm93_vm1, %v1394_v18, %v503_v21 }
 0x4c7   :  { %v507_v24 = vmul.f32 %v505_v23, %v502_v22  ;;  %v677_v22 = vld [vmem:[%s676_s27] sm:$0x3] }
 0x4c9   :  { %509 = vrot.lane.b32.xlu0 %v507_v24, %s1515_s21 }
 0x53b   :  { %v510_v28 = vpop.permute.xlu0 %509 }
 0x53c   :  { %v1794_v29 = vadd.f32 %v510_v28, %v506_v26 }
 0x53e   :  { %1395 = vtanh.f32 %v1794_v29 }
 0x54b   :  { %v1396_v31 = vpop.eup %1395 }
 0x54c   :  { %v514_v32 = vmul.f32 %v1396_v31, %v505_v23  ;;  %v669_v23 = vadd.f32 %v668_v20, %v665_v19 }
 0x54e   :  { %516 = vrot.lane.b32.xlu1 %v514_v32, %s1515_s21  ;;  %v683_v26 = vrot.slane %v669_v23, %v1659_v25 }
 0x5c0   :  { %v517_v33 = vpop.permute.xlu1 %516 }
 0x5c1   :  { %1318 = vst.msk [vmem:[%s1988_s4 + $0x4] sm:$0x3] %vm239_vm2, %v517_v33  ;;  %1327 = vmatmul.mubr.msk.f32.vlgmr.msra.gmra.mxu1 %vm141_vm3, %v517_v33 }
 0x5c2   :  { %862 = vmatpush1.msra.mxu1 %v1555_v1  ;;  %909 = vmatprep.mubr.f32.mxu1 %v1513_v4 }
 0x5c3   :  { %863 = vmatprep.subr.mxu1 %v1557_v2 }
 0x5c4   :  { %864 = vmatpush1.msra.mxu1 %v1560_v3 }
 0x5c5   :  { %865 = vmatprep.subr.mxu1 %v1564_v5 }
 0x5c6   :  { %866 = vmatpush1.msra.mxu1 %v1568_v6 }
 0x5c7   :  { %867 = vmatprep.subr.mxu1 %v1572_v7 }
 0x5c8   :  { %868 = vmatpush1.msra.mxu1 %v1576_v8 }
 0x5c9   :  { %869 = vmatprep.subr.mxu1 %v1580_v9 }
 0x5ca   :  { %870 = vmatpush1.msra.mxu1 %v1584_v10 }
 0x5cb   :  { %871 = vmatprep.subr.mxu1 %v1588_v11 }
 0x5cc   :  { %872 = vmatpush1.msra.mxu1 %v1592_v12 }
 0x5cd   :  { %873 = vmatprep.subr.mxu1 %v1596_v13 }
 0x5ce   :  { %874 = vmatpush1.msra.mxu1 %v1600_v14 }
 0x5cf   :  { %875 = vmatprep.subr.mxu1 %v1604_v15 }
 0x5d0   :  { %876 = vmatpush1.msra.mxu1 %v1608_v16 }
 0x5d1   :  { %1141 = vmatprep.subr.mxu1 %v1553_v0  ;;  %v525_v0 = vld [vmem:[%s524_s14] sm:$0x3]  ;;  %s673_s14 = scalar_lea.vmem [#allocation5], %s1326_s13 }
 0x5d2   :  { %v529_v37 = vadd.f32 %v528_v34, %v525_v0  ;;  %v674_v21 = vld [vmem:[%s673_s14] sm:$0x3]  ;;  %s2002_s14 = sshll.u32 %s1643_s11, 1 }
 0x5d3   :  { %v678_v24 = vadd.f32 %v677_v22, %v674_v21  ;;  %s1096_s27 = scalar_lea.vmem [#allocation6], %s2002_s14 }
 0x5d4   :  { %v543_v40 = vrot.slane %v529_v37, %v1659_v25  ;;  %v547_v42 = vrot.slane %v529_v37, %v1661_v27 }
 0x5d5   :  { %v694_v28 = vrot.slane %v678_v24, %v1659_v25  ;;  %v698_v31 = vrot.slane %v678_v24, %v1661_v27  ;;  %v948_v24 = vld [vmem:[%s947_s20] sm:$0x3] }
 0x5d6   :  { %v561_v44 = vsel %vm138_vm0, %v543_v40, %v554_v41  ;;  %v562_v46 = vsel %vm138_vm0, %v547_v42, %v558_v43 }
 0x5d7   :  { %v701_v32 = vsel %vm138_vm0, %v683_v26, %v694_v28  ;;  %v954_v26 = vld [vmem:[%s953_s23] sm:$0x3] }
 0x5d8   :  { %v957_v28 = vld [vmem:[%s956_s9] sm:$0x3] }
 0x681   :  { %v631_v45 = vpop.f32.mrf.mxu1 }
 0x682   :  { %v632_v47 = vadd.f32 %v631_v45, %v561_v44 }
 0x683   :  { %v633_v48 = vpop.f32.mrf.mxu1 }
 0x684   :  { %v636_v49 = vmul.f32 0.5, %v632_v47  ;;  %v634_v50 = vadd.f32 %v633_v48, %v562_v46 }
 0x686   :  { %1397 = vtanh.f32 %v636_v49  ;;  %v637_v51 = vmul.f32 %v634_v50, %v1674_v38 }
 0x688   :  { %1399 = vtanh.f32 %v637_v51 }
 0x693   :  { %v1398_v52 = vpop.eup %1397 }
 0x694   :  { %v640_v54 = vadd.f32 1.0, %v1398_v52 }
 0x695   :  { %v1400_v53 = vpop.eup %1399 }
 0x696   :  { %v641_v55 = vadd.f32 1.0, %v1400_v53  ;;  %v642_v57 = vmul.f32 0.5, %v640_v54 }
 0x698   :  { %v643_v56 = vmul.f32 0.5, %v641_v55  ;;  %v646_v60 = vmul.f32 %v642_v57, %v1794_v29  ;;  %v687_v29 = vrot.slane %v669_v23, %v1661_v27  ;;  %v945_v23 = vld [vmem:[%s944_s18] sm:$0x3] }
 0x69a   :  { %v645_v58 = vsel %vm93_vm1, %v1400_v53, %v643_v56  ;;  %v702_v0 = vsel %vm138_vm0, %v687_v29, %v698_v31  ;;  %v949_v29 = vadd.f32 %v948_v24, %v945_v23  ;;  %v958_v31 = vadd.f32 %v957_v28, %v954_v26 }
 0x69b   :  { %v647_v59 = vmul.f32 %v645_v58, %v642_v57 }
 0x69d   :  { %649 = vrot.lane.b32.xlu0 %v647_v59, %s1515_s21 }
 0x70f   :  { %v650_v61 = vpop.permute.xlu0 %649 }
 0x710   :  { %v652_v62 = vadd.f32 %v650_v61, %v646_v60 }
 0x712   :  { %1401 = vtanh.f32 %v652_v62 }
 0x71f   :  { %v1402_v63 = vpop.eup %1401 }
 0x720   :  { %v654_v17 = vmul.f32 %v1402_v63, %v645_v58 }
 0x722   :  { %656 = vrot.lane.b32.xlu1 %v654_v17, %s1515_s21 }
 0x794   :  { %v657_v18 = vpop.permute.xlu1 %656 }
 0x795   :  { %1328 = vst.msk [vmem:[%s1988_s4 + $0x6] sm:$0x3] %vm239_vm2, %v657_v18  ;;  %1337 = vmatmul.mubr.msk.f32.vlgmr.msra.gmra.mxu0 %vm141_vm3, %v657_v18 }
 0x796   :  { %1002 = vmatpush1.msra.mxu0 %v1555_v1  ;;  %1049 = vmatprep.mubr.f32.mxu0 %v1513_v4 }
 0x797   :  { %1003 = vmatprep.subr.mxu0 %v1557_v2 }
 0x798   :  { %1004 = vmatpush1.msra.mxu0 %v1560_v3 }
 0x799   :  { %1005 = vmatprep.subr.mxu0 %v1564_v5 }
 0x79a   :  { %1006 = vmatpush1.msra.mxu0 %v1568_v6 }
 0x79b   :  { %1007 = vmatprep.subr.mxu0 %v1572_v7 }
 0x79c   :  { %1008 = vmatpush1.msra.mxu0 %v1576_v8 }
 0x79d   :  { %1009 = vmatprep.subr.mxu0 %v1580_v9 }
 0x79e   :  { %1010 = vmatpush1.msra.mxu0 %v1584_v10 }
 0x79f   :  { %1011 = vmatprep.subr.mxu0 %v1588_v11 }
 0x7a0   :  { %1012 = vmatpush1.msra.mxu0 %v1592_v12 }
 0x7a1   :  { %1013 = vmatprep.subr.mxu0 %v1596_v13 }
 0x7a2   :  { %1014 = vmatpush1.msra.mxu0 %v1600_v14 }
 0x7a3   :  { %1015 = vmatprep.subr.mxu0 %v1604_v15 }
 0x7a4   :  { %1016 = vmatpush1.msra.mxu0 %v1608_v16 }
 0x855   :  { %v771_v33 = vpop.f32.mrf.mxu0 }
 0x856   :  { %v772_v34 = vadd.f32 %v771_v33, %v701_v32  ;;  %v963_v32 = vrot.slane %v949_v29, %v1659_v25  ;;  %v974_v33 = vrot.slane %v958_v31, %v1659_v25 }
 0x857   :  { %v773_v35 = vpop.f32.mrf.mxu0 }
 0x858   :  { %v776_v36 = vmul.f32 0.5, %v772_v34  ;;  %v774_v37 = vadd.f32 %v773_v35, %v702_v0  ;;  %v967_v0 = vrot.slane %v949_v29, %v1661_v27  ;;  %v978_v34 = vrot.slane %v958_v31, %v1661_v27 }
 0x859   :  { %v981_v35 = vsel %vm138_vm0, %v963_v32, %v974_v33 }
 0x85a   :  { %1403 = vtanh.f32 %v776_v36  ;;  %v777_v39 = vmul.f32 %v774_v37, %v1674_v38  ;;  %v982_v37 = vsel %vm138_vm0, %v967_v0, %v978_v34 }
 0x85c   :  { %1405 = vtanh.f32 %v777_v39 }
 0x867   :  { %v1404_v40 = vpop.eup %1403 }
 0x868   :  { %v780_v42 = vadd.f32 1.0, %v1404_v40 }
 0x869   :  { %v1406_v41 = vpop.eup %1405 }
 0x86a   :  { %v781_v43 = vadd.f32 1.0, %v1406_v41  ;;  %v782_v45 = vmul.f32 0.5, %v780_v42 }
 0x86c   :  { %v783_v44 = vmul.f32 0.5, %v781_v43  ;;  %v786_v48 = vmul.f32 %v782_v45, %v652_v62 }
 0x86e   :  { %v785_v46 = vsel %vm93_vm1, %v1406_v41, %v783_v44 }
 0x86f   :  { %v787_v47 = vmul.f32 %v785_v46, %v782_v45 }
 0x871   :  { %789 = vrot.lane.b32.xlu0 %v787_v47, %s1515_s21 }
 0x8e3   :  { %v790_v49 = vpop.permute.xlu0 %789 }
 0x8e4   :  { %v792_v50 = vadd.f32 %v790_v49, %v786_v48 }
 0x8e6   :  { %1407 = vtanh.f32 %v792_v50 }
 0x8f3   :  { %v1408_v51 = vpop.eup %1407 }
 0x8f4   :  { %v794_v52 = vmul.f32 %v1408_v51, %v785_v46 }
 0x8f6   :  { %796 = vrot.lane.b32.xlu1 %v794_v52, %s1515_s21 }
 0x968   :  { %v797_v53 = vpop.permute.xlu1 %796 }
 0x969   :  { %1338 = vst.msk [vmem:[%s1988_s4 + $0x8] sm:$0x3] %vm239_vm2, %v797_v53  ;;  %1347 = vmatmul.mubr.msk.f32.vlgmr.msra.gmra.mxu1 %vm141_vm3, %v797_v53 }
 0x96a   :  { %1142 = vmatpush1.msra.mxu1 %v1555_v1  ;;  %1189 = vmatprep.mubr.f32.mxu1 %v1513_v4  ;;  %v805_v1 = vld [vmem:[%s804_s16] sm:$0x3] }
 0x96b   :  { %1143 = vmatprep.subr.mxu1 %v1557_v2  ;;  %v808_v2 = vld [vmem:[%s807_s6] sm:$0x3] }
 0x96c   :  { %1144 = vmatpush1.msra.mxu1 %v1560_v3  ;;  %v814_v3 = vld [vmem:[%s813_s7] sm:$0x3] }
 0x96d   :  { %1145 = vmatprep.subr.mxu1 %v1564_v5  ;;  %v817_v4 = vld [vmem:[%s816_s8] sm:$0x3]  ;;  %v809_v5 = vadd.f32 %v808_v2, %v805_v1 }
 0x96e   :  { %1146 = vmatpush1.msra.mxu1 %v1568_v6  ;;  %v818_v6 = vadd.f32 %v817_v4, %v814_v3 }
 0x96f   :  { %1147 = vmatprep.subr.mxu1 %v1572_v7  ;;  %v823_v7 = vrot.slane %v809_v5, %v1659_v25 }
 0x970   :  { %1148 = vmatpush1.msra.mxu1 %v1576_v8  ;;  %v834_v8 = vrot.slane %v818_v6, %v1659_v25 }
 0x971   :  { %1149 = vmatprep.subr.mxu1 %v1580_v9  ;;  %v827_v9 = vrot.slane %v809_v5, %v1661_v27  ;;  %v1085_v5 = vld [vmem:[%s1084_s26] sm:$0x3] }
 0x972   :  { %1150 = vmatpush1.msra.mxu1 %v1584_v10  ;;  %v838_v10 = vrot.slane %v818_v6, %v1661_v27  ;;  %v1088_v6 = vld [vmem:[%s1087_s5] sm:$0x3] }
 0x973   :  { %1151 = vmatprep.subr.mxu1 %v1588_v11  ;;  %v841_v11 = vsel %vm138_vm0, %v823_v7, %v834_v8  ;;  %v1094_v7 = vld [vmem:[%s1093_s30] sm:$0x3] }
 0x974   :  { %1152 = vmatpush1.msra.mxu1 %v1592_v12  ;;  %v1097_v8 = vld [vmem:[%s1096_s27] sm:$0x3] }
 0x975   :  { %1153 = vmatprep.subr.mxu1 %v1596_v13  ;;  %v842_v13 = vsel %vm138_vm0, %v827_v9, %v838_v10  ;;  %v1089_v9 = vadd.f32 %v1088_v6, %v1085_v5  ;;  %v1098_v10 = vadd.f32 %v1097_v8, %v1094_v7 }
 0x976   :  { %1154 = vmatpush1.msra.mxu1 %v1600_v14 }
 0x977   :  { %1155 = vmatprep.subr.mxu1 %v1604_v15 }
 0x978   :  { %1156 = vmatpush1.msra.mxu1 %v1608_v16 }
 0xa29   :  { %v911_v12 = vpop.f32.mrf.mxu1 }
 0xa2a   :  { %v912_v14 = vadd.f32 %v911_v12, %v841_v11  ;;  %v1103_v11 = vrot.slane %v1089_v9, %v1659_v25  ;;  %v1114_v12 = vrot.slane %v1098_v10, %v1659_v25 }
 0xa2b   :  { %v913_v15 = vpop.f32.mrf.mxu1 }
 0xa2c   :  { %v916_v16 = vmul.f32 0.5, %v912_v14  ;;  %v914_v54 = vadd.f32 %v913_v15, %v842_v13  ;;  %v1107_v13 = vrot.slane %v1089_v9, %v1661_v27  ;;  %v1118_v14 = vrot.slane %v1098_v10, %v1661_v27 }
 0xa2d   :  { %v1121_v15 = vsel %vm138_vm0, %v1103_v11, %v1114_v12 }
 0xa2e   :  { %1409 = vtanh.f32 %v916_v16  ;;  %v917_v55 = vmul.f32 %v914_v54, %v1674_v38  ;;  %v1122_v54 = vsel %vm138_vm0, %v1107_v13, %v1118_v14 }
 0xa30   :  { %1411 = vtanh.f32 %v917_v55 }
 0xa3b   :  { %v1410_v56 = vpop.eup %1409 }
 0xa3c   :  { %v920_v58 = vadd.f32 1.0, %v1410_v56 }
 0xa3d   :  { %v1412_v57 = vpop.eup %1411 }
 0xa3e   :  { %v921_v59 = vadd.f32 1.0, %v1412_v57  ;;  %v922_v61 = vmul.f32 0.5, %v920_v58 }
 0xa40   :  { %v923_v60 = vmul.f32 0.5, %v921_v59  ;;  %v926_v17 = vmul.f32 %v922_v61, %v792_v50 }
 0xa42   :  { %v925_v62 = vsel %vm93_vm1, %v1412_v57, %v923_v60 }
 0xa43   :  { %v927_v63 = vmul.f32 %v925_v62, %v922_v61 }
 0xa45   :  { %929 = vrot.lane.b32.xlu0 %v927_v63, %s1515_s21 }
 0xab7   :  { %v930_v18 = vpop.permute.xlu0 %929 }
 0xab8   :  { %v932_v19 = vadd.f32 %v930_v18, %v926_v17 }
 0xaba   :  { %1413 = vtanh.f32 %v932_v19 }
 0xac7   :  { %v1414_v20 = vpop.eup %1413 }
 0xac8   :  { %v934_v21 = vmul.f32 %v1414_v20, %v925_v62 }
 0xaca   :  { %936 = vrot.lane.b32.xlu1 %v934_v21, %s1515_s21 }
 0xb3c   :  { %v937_v22 = vpop.permute.xlu1 %936 }
 0xb3d   :  { %1348 = vst.msk [vmem:[%s1988_s4 + $0xa] sm:$0x3] %vm239_vm2, %v937_v22  ;;  %1357 = vmatmul.mubr.msk.f32.vlgmr.msra.gmra.mxu0 %vm141_vm3, %v937_v22 }
 0xbfd   :  { %v1051_v36 = vpop.f32.mrf.mxu0 }
 0xbfe   :  { %v1052_v39 = vadd.f32 %v1051_v36, %v981_v35 }
 0xbff   :  { %v1053_v40 = vpop.f32.mrf.mxu0 }
 0xc00   :  { %v1056_v41 = vmul.f32 0.5, %v1052_v39  ;;  %v1054_v42 = vadd.f32 %v1053_v40, %v982_v37 }
 0xc02   :  { %1415 = vtanh.f32 %v1056_v41  ;;  %v1057_v43 = vmul.f32 %v1054_v42, %v1674_v38 }
 0xc04   :  { %1417 = vtanh.f32 %v1057_v43 }
 0xc0f   :  { %v1416_v44 = vpop.eup %1415 }
 0xc10   :  { %v1060_v46 = vadd.f32 1.0, %v1416_v44 }
 0xc11   :  { %v1418_v45 = vpop.eup %1417 }
 0xc12   :  { %v1061_v47 = vadd.f32 1.0, %v1418_v45  ;;  %v1062_v49 = vmul.f32 0.5, %v1060_v46 }
 0xc14   :  { %v1063_v48 = vmul.f32 0.5, %v1061_v47  ;;  %v1066_v52 = vmul.f32 %v1062_v49, %v932_v19 }
 0xc16   :  { %v1065_v50 = vsel %vm93_vm1, %v1418_v45, %v1063_v48 }
 0xc17   :  { %v1067_v51 = vmul.f32 %v1065_v50, %v1062_v49 }
 0xc19   :  { %1069 = vrot.lane.b32.xlu0 %v1067_v51, %s1515_s21 }
 0xc8b   :  { %v1070_v53 = vpop.permute.xlu0 %1069 }
 0xc8c   :  { %v1072_v1 = vadd.f32 %v1070_v53, %v1066_v52 }
 0xc8e   :  { %1419 = vtanh.f32 %v1072_v1 }
 0xc9b   :  { %v1420_v2 = vpop.eup %1419 }
 0xc9c   :  { %v1074_v3 = vmul.f32 %v1420_v2, %v1065_v50 }
 0xc9e   :  { %1076 = vrot.lane.b32.xlu1 %v1074_v3, %s1515_s21 }
 0xd10   :  { %v1077_v4 = vpop.permute.xlu1 %1076 }
 0xd11   :  { %1358 = vst.msk [vmem:[%s1988_s4 + $0xc] sm:$0x3] %vm239_vm2, %v1077_v4  ;;  %1366 = vmatmul.mubr.msk.f32.vlgmr.msra.gmra.mxu1 %vm141_vm3, %v1077_v4 }
 0xdd1   :  { %v1191_v16 = vpop.f32.mrf.mxu1 }
 0xdd2   :  { %v1192_v55 = vadd.f32 %v1191_v16, %v1121_v15 }
 0xdd3   :  { %v1193_v56 = vpop.f32.mrf.mxu1 }
 0xdd4   :  { %v1196_v57 = vmul.f32 0.5, %v1192_v55  ;;  %v1194_v58 = vadd.f32 %v1193_v56, %v1122_v54 }
 0xdd6   :  { %1421 = vtanh.f32 %v1196_v57  ;;  %v1197_v59 = vmul.f32 %v1194_v58, %v1674_v38 }
 0xdd8   :  { %1423 = vtanh.f32 %v1197_v59 }
 0xde3   :  { %v1422_v60 = vpop.eup %1421 }
 0xde4   :  { %v1200_v25 = vadd.f32 1.0, %v1422_v60 }
 0xde5   :  { %v1424_v61 = vpop.eup %1423 }
 0xde6   :  { %v1201_v62 = vadd.f32 1.0, %v1424_v61  ;;  %v1202_v17 = vmul.f32 0.5, %v1200_v25 }
 0xde8   :  { %v1203_v63 = vmul.f32 0.5, %v1201_v62  ;;  %v1206_v19 = vmul.f32 %v1202_v17, %v1072_v1 }
 0xdea   :  { %v1205_v27 = vsel %vm93_vm1, %v1424_v61, %v1203_v63 }
 0xdeb   :  { %v1207_v18 = vmul.f32 %v1205_v27, %v1202_v17 }
 0xded   :  { %1209 = vrot.lane.b32.xlu0 %v1207_v18, %s1515_s21 }
 0xe5f   :  { %v1210_v20 = vpop.permute.xlu0 %1209 }
 0xe60   :  { %v1212_v21 = vadd.f32 %v1210_v20, %v1206_v19 }
 0xe62   :  { %1425 = vtanh.f32 %v1212_v21 }
 0xe6f   :  { %v1426_v22 = vpop.eup %1425 }
 0xe70   :  { %v1214_v23 = vmul.f32 %v1426_v22, %v1205_v27 }
 0xe72   :  { %1216 = vrot.lane.b32.xlu1 %v1214_v23, %s1515_s21 }
 0xee4   :  { %v1217_v38 = vpop.permute.xlu1 %1216 }
 0xee5   :  { %1367 = vst.msk [vmem:[%s1988_s4 + $0xe] sm:$0x3] %vm239_vm2, %v1217_v38 }
 0xee6   :  { %1225 = vsyncpa [#allocation3], 1 }
 0xee7   :  { %1226 = vsyncpa [#allocation7], 1 }
 0xee8   :  { %1227 = vsyncpa [#allocation4], 1 }

</bundles_post_ra>
